<compile_context>
chip_gen: v7x
topology: tpu7x:2x2x1
jax: 0.10.0
libtpu: 0.0.40
codegen_flags: <defaults>
</compile_context>

<pallas_src>
import functools

import jax
import jax.numpy as jnp
from jax.experimental import pallas as pl
from jax.experimental.pallas import tpu as pltpu

LARGE_NEG = -1000000000.0
LN_EPS = 1e-5


def _layer_norm(x, w, b):
    # x: (R, D); w, b: (1, D). PyTorch LayerNorm: biased variance, eps=1e-5.
    mu = jnp.mean(x, axis=-1, keepdims=True)
    xc = x - mu
    var = jnp.mean(xc * xc, axis=-1, keepdims=True)
    inv = jax.lax.rsqrt(var + LN_EPS)
    return xc * inv * w + b


def _prepare_params(wq, wk, wv, wo, linw, ln1w, ln1b, linb, ln2w, ln2b,
                    matmul_dtype):
    """Host-side layout plumbing: stack heads, fold scale, transpose FFN, pack LN."""
    h, d, _ = wq.shape
    d_v = wv.shape[2]
    scale = 1.0 / (float(d) ** 0.5)
    # Column block h of *_cat equals the per-head weight matrix.
    wq_cat = (jnp.transpose(wq, (1, 0, 2)).reshape(d, h * d) * scale).astype(matmul_dtype)
    wk_cat = jnp.transpose(wk, (1, 0, 2)).reshape(d, h * d).astype(matmul_dtype)
    wv_cat = jnp.transpose(wv, (1, 0, 2)).reshape(d, h * d_v).astype(matmul_dtype)
    wo_c = wo.astype(matmul_dtype)
    linw_t = jnp.transpose(linw).astype(matmul_dtype)   # nn.Linear: z @ W^T + b
    # Pack the five (1, D) vectors into a single (8, D) tile:
    # rows: 0=ln1w, 1=ln1b, 2=ffn bias, 3=ln2w, 4=ln2b, 5..7 unused padding.
    ln_pack = jnp.zeros((8, d), jnp.float32)
    ln_pack = (ln_pack.at[0].set(ln1w[0]).at[1].set(ln1b[0]).at[2].set(linb[0])
               .at[3].set(ln2w[0]).at[4].set(ln2b[0]))
    return wq_cat, wk_cat, wv_cat, wo_c, linw_t, ln_pack


def decoder_layer_kernel(x_ref, wq_ref, wk_ref, wv_ref, wo_ref, linwt_ref,
                         ln_ref, out_ref, heads_ref, *,
                         batch, seq_len, n_heads, d_model, d_v, matmul_dtype):
    x_mm = x_ref[...]                       # (B*N, D) in matmul_dtype
    x_f32 = x_mm.astype(jnp.float32)        # residual / LayerNorm path stays fp32

    # ---- fused QKV projections: three large MXU matmuls over all batches ----
    q_all = jnp.dot(x_mm, wq_ref[...], preferred_element_type=jnp.float32)  # (B*N, H*D), scale folded
    k_all = jnp.dot(x_mm, wk_ref[...], preferred_element_type=jnp.float32)  # (B*N, H*D)
    v_all = jnp.dot(x_mm, wv_ref[...], preferred_element_type=jnp.float32)  # (B*N, H*Dv)

    exact = matmul_dtype == jnp.float32

    # ---- per-(head, batch) attention with static, 128-aligned slices ----
    # TODO(synk): at N >= 1024 replace with flash-style q/kv tiling on grid axes.
    for h in range(n_heads):
        c_q = h * d_model
        c_v = h * d_v
        head_rows = []
        for b in range(batch):
            r = b * seq_len
            q = q_all[r:r + seq_len, c_q:c_q + d_model].astype(matmul_dtype)
            k = k_all[r:r + seq_len, c_q:c_q + d_model].astype(matmul_dtype)
            v = v_all[r:r + seq_len, c_v:c_v + d_v].astype(matmul_dtype)
            # q @ k^T by contracting both last dims (MXU transposed-RHS path,
            # no explicit XLU transpose of k).
            s = jax.lax.dot_general(q, k, (((1,), (1,)), ((), ())),
                                    preferred_element_type=jnp.float32)      # (N, N) fp32
            s = s - jnp.max(s, axis=-1, keepdims=True)
            p = jnp.exp(s)
            denom = jnp.sum(p, axis=-1, keepdims=True)
            if exact:
                p = p / denom                                  # exact for fp32 parity
            else:
                p = p * pl.reciprocal(denom, approx=True)      # EUP slot, not VALU
            head_rows.append(jnp.dot(p.astype(matmul_dtype), v,
                                     preferred_element_type=jnp.float32))    # (N, Dv)
        # One tile-aligned, lane-dense store per head into the scratch that
        # feeds the output projection (no big fp32 concat buffer / cast pass).
        heads_ref[:, c_v:c_v + d_v] = jnp.concatenate(
            head_rows, axis=0).astype(matmul_dtype)

    # ---- single output projection over the concatenated heads ----
    y = jnp.dot(heads_ref[...], wo_ref[...],
                preferred_element_type=jnp.float32)                          # (B*N, D)

    # ---- the (quirky, by-reference) triu mask over the (seq, d_model) plane ----
    # Generated in-kernel: iota + compare is free VPU filler, no HBM/VMEM cost.
    rows = jax.lax.broadcasted_iota(jnp.int32, y.shape, 0) % seq_len
    cols = jax.lax.broadcasted_iota(jnp.int32, y.shape, 1)
    y = jnp.where(cols > rows, jnp.float32(LARGE_NEG), y)

    ln1w, ln1b = ln_ref[0:1, :], ln_ref[1:2, :]
    linb = ln_ref[2:3, :]
    ln2w, ln2b = ln_ref[3:4, :], ln_ref[4:5, :]

    # ---- residual + LayerNorm1 (fp32) ----
    z = _layer_norm(x_f32 + y, ln1w, ln1b)

    # ---- feed-forward (weight pre-transposed host-side) ----
    z_mlp = jnp.dot(z.astype(matmul_dtype), linwt_ref[...],
                    preferred_element_type=jnp.float32) + linb

    # ---- residual + LayerNorm2 (fp32) ----
    out_ref[...] = _layer_norm(z + z_mlp, ln2w, ln2b)


def _vmem_limit_bytes():
    # Generation-aware VMEM budget: 64 MiB/TC on v7x vs 128 MiB on v5e/v6e.
    try:
        cap = pltpu.get_tpu_info().vmem_capacity_bytes
    except Exception:
        cap = 64 * 1024 * 1024   # conservative (v7x per-TC) fallback
    return max(16 * 1024 * 1024, (cap * 3) // 4)


def decoder_layer(x, wq, wk, wv, wo, ln1w, ln1b, linw, linb, ln2w, ln2b,
                  *, matmul_dtype=jnp.bfloat16):
    b, n, d = x.shape
    h, _, d_v = wv.shape

    wq_cat, wk_cat, wv_cat, wo_c, linw_t, ln_pack = _prepare_params(
        wq, wk, wv, wo, linw, ln1w, ln1b, linb, ln2w, ln2b, matmul_dtype)

    # Collapse batch into the row dimension: one grid step, one (B*N, D) MXU
    # block.  (B*N stays a multiple of 16 here so the bf16 x block is tile-ok.)
    # TODO(synk): on v7x keep a "parallel" batch/q-tile grid axis so both
    # TensorCores get work once shapes are non-toy.
    x2d = x.reshape(b * n, d).astype(matmul_dtype)

    kernel = functools.partial(decoder_layer_kernel, batch=b, seq_len=n,
                               n_heads=h, d_model=d, d_v=d_v,
                               matmul_dtype=matmul_dtype)

    def build(weight_buffer_count):
        if weight_buffer_count is None:
            wspec = lambda shape: pl.BlockSpec(shape, lambda i: (0,) * len(shape))
        else:
            wspec = lambda shape: pl.BlockSpec(
                shape, lambda i: (0,) * len(shape),
                pipeline_mode=pl.Buffered(weight_buffer_count))
        return pl.pallas_call(
            kernel,
            out_shape=jax.ShapeDtypeStruct((b * n, d), jnp.float32),
            grid_spec=pltpu.PrefetchScalarGridSpec(
                num_scalar_prefetch=0,
                grid=(1,),
                in_specs=[
                    pl.BlockSpec((b * n, d), lambda i: (0, 0)),  # X (matmul_dtype)
                    wspec((d, h * d)),                           # W_q (stacked, scaled)
                    wspec((d, h * d)),                           # W_k (stacked)
                    wspec((d, h * d_v)),                         # W_v (stacked)
                    wspec((h * d_v, d)),                         # W_o
                    wspec((d, d)),                               # FFN weight (pre-transposed)
                    wspec((8, d)),                               # packed LN / bias vectors
                ],
                out_specs=pl.BlockSpec((b * n, d), lambda i: (0, 0)),
                scratch_shapes=[pltpu.VMEM((b * n, h * d_v), matmul_dtype)],
            ),
            compiler_params=pltpu.CompilerParams(
                dimension_semantics=("arbitrary",),
                vmem_limit_bytes=_vmem_limit_bytes(),
            ),
        )

    operands = (x2d, wq_cat, wk_cat, wv_cat, wo_c, linw_t, ln_pack)
    try:
        # Grid-invariant operands: request a single pipeline buffer.
        out2d = build(1)(*operands)
    except Exception:
        # pipeline_mode=pl.Buffered unsupported on this jax/libtpu combo:
        # fall back to default double buffering (identical results).
        out2d = build(None)(*operands)
    return out2d.reshape(b, n, d)


# ---------------------------------------------------------------------------
# References
# ---------------------------------------------------------------------------
def decoder_layer_reference(x, wq, wk, wv, wo, ln1w, ln1b, linw, linb, ln2w, ln2b):
    """Pure-JAX fp32 reference mirroring the PyTorch forward exactly."""
    b, n, d = x.shape
    h = wq.shape[0]
    heads = []
    for hh in range(h):
        q = x @ wq[hh]
        k = x @ wk[hh]
        v = x @ wv[hh]
        s = (q @ jnp.swapaxes(k, -1, -2)) / jnp.sqrt(jnp.float32(d))
        p = jax.nn.softmax(s, axis=-1)
        heads.append(p @ v)
    y = jnp.concatenate(heads, axis=-1) @ wo
    row = jnp.arange(n)[:, None]
    col = jnp.arange(d)[None, :]
    y = jnp.where((col > row)[None], LARGE_NEG, y)

    def ln(t, w_, b_):
        mu = jnp.mean(t, axis=-1, keepdims=True)
        var = jnp.mean((t - mu) ** 2, axis=-1, keepdims=True)
        return (t - mu) / jnp.sqrt(var + LN_EPS) * w_ + b_

    z = ln(x + y, ln1w[0], ln1b[0])
    z_mlp = z @ linw.T + linb[0]
    return ln(z + z_mlp, ln2w[0], ln2b[0])


def decoder_layer_fused_reference(x, wq, wk, wv, wo, ln1w, ln1b, linw, linb,
                                  ln2w, ln2b, *, matmul_dtype=jnp.bfloat16):
    """Cast-consistent reference mirroring the fused-kernel math (for bf16 check)."""
    b, n, d = x.shape
    h, _, d_v = wv.shape
    wq_cat, wk_cat, wv_cat, wo_c, linw_t, ln_pack = _prepare_params(
        wq, wk, wv, wo, linw, ln1w, ln1b, linb, ln2w, ln2b, matmul_dtype)
    x2d = x.reshape(b * n, d).astype(matmul_dtype)
    x_f32 = x2d.astype(jnp.float32)
    q_all = jnp.dot(x2d, wq_cat, preferred_element_type=jnp.float32)
    k_all = jnp.dot(x2d, wk_cat, preferred_element_type=jnp.float32)
    v_all = jnp.dot(x2d, wv_cat, preferred_element_type=jnp.float32)
    heads = jnp.zeros((b * n, h * d_v), matmul_dtype)
    for hh in range(h):
        for bb in range(b):
            r = bb * n
            q = q_all[r:r + n, hh * d:(hh + 1) * d].astype(matmul_dtype)
            k = k_all[r:r + n, hh * d:(hh + 1) * d].astype(matmul_dtype)
            v = v_all[r:r + n, hh * d_v:(hh + 1) * d_v].astype(matmul_dtype)
            s = jax.lax.dot_general(q, k, (((1,), (1,)), ((), ())),
                                    preferred_element_type=jnp.float32)
            s = s - jnp.max(s, axis=-1, keepdims=True)
            p = jnp.exp(s)
            p = p / jnp.sum(p, axis=-1, keepdims=True)
            hv = jnp.dot(p.astype(matmul_dtype), v,
                         preferred_element_type=jnp.float32).astype(matmul_dtype)
            heads = heads.at[r:r + n, hh * d_v:(hh + 1) * d_v].set(hv)
    y = jnp.dot(heads, wo_c, preferred_element_type=jnp.float32)
    rows = jnp.arange(b * n)[:, None] % n
    cols = jnp.arange(d)[None, :]
    y = jnp.where(cols > rows, jnp.float32(LARGE_NEG), y)

    def ln(t, w_, b_):
        mu = jnp.mean(t, axis=-1, keepdims=True)
        var = jnp.mean((t - mu) ** 2, axis=-1, keepdims=True)
        return (t - mu) * jax.lax.rsqrt(var + LN_EPS) * w_ + b_

    z = ln(x_f32 + y, ln_pack[0:1], ln_pack[1:2])
    z_mlp = jnp.dot(z.astype(matmul_dtype), linw_t,
                    preferred_element_type=jnp.float32) + ln_pack[2:3]
    out = ln(z + z_mlp, ln_pack[3:4], ln_pack[4:5])
    return out.reshape(b, n, d)


if __name__ == "__main__":
    # Small but lane/MXU-aligned shapes: batch=2, seq=8, d_model=128, heads=2, D_v=128.
    B, N, D_MODEL, H, D_V = 2, 8, 128, 2, 128

    key = jax.random.PRNGKey(0)
    ks = jax.random.split(key, 8)

    x = jax.random.normal(ks[0], (B, N, D_MODEL), jnp.float32)

    # Parameter init with shapes matching the module's __init__.
    wq = jax.random.normal(ks[1], (H, D_MODEL, D_MODEL), jnp.float32)
    wk = jax.random.normal(ks[2], (H, D_MODEL, D_MODEL), jnp.float32)
    wv = jax.random.normal(ks[3], (H, D_MODEL, D_V), jnp.float32)
    wo = jax.random.normal(ks[4], (H * D_V, D_MODEL), jnp.float32)
    ln1w = jnp.ones((1, D_MODEL), jnp.float32)
    ln1b = jnp.zeros((1, D_MODEL), jnp.float32)
    ln2w = jnp.ones((1, D_MODEL), jnp.float32)
    ln2b = jnp.zeros((1, D_MODEL), jnp.float32)
    bound = 1.0 / float(D_MODEL) ** 0.5
    linw = jax.random.uniform(ks[5], (D_MODEL, D_MODEL), jnp.float32, -bound, bound)
    linb = jax.random.uniform(ks[6], (1, D_MODEL), jnp.float32, -bound, bound)

    args = (x, wq, wk, wv, wo, ln1w, ln1b, linw, linb, ln2w, ln2b)

    # ---- default (bf16 MXU) path: validated against cast-consistent reference ----
    out_bf16 = jax.block_until_ready(decoder_layer(*args))
    ref_bf16 = jax.block_until_ready(
        decoder_layer_fused_reference(*args, matmul_dtype=jnp.bfloat16))
    assert out_bf16.shape == (B, N, D_MODEL)
    assert jnp.allclose(out_bf16, ref_bf16, rtol=2e-2, atol=2e-2), \
        "bf16 kernel/reference mismatch"

    # ---- fp32 path: must match the faithful PyTorch-style reference ----
    out_f32 = jax.block_until_ready(decoder_layer(*args, matmul_dtype=jnp.float32))
    ref_f32 = jax.block_until_ready(decoder_layer_reference(*args))
    assert jnp.allclose(out_f32, ref_f32, rtol=1e-3, atol=1e-3), \
        "fp32 kernel/reference mismatch"

    print("KERNEL_OK")
</pallas_src>

<mosaic_0001>
module attributes {stable_mosaic.version = 11 : i64} {
  func.func @decoder_layer_kernel(%arg0: i32, %arg1: memref<16x128xbf16, #tpu.memory_space<vmem>>, %arg2: memref<128x256xbf16, #tpu.memory_space<vmem>>, %arg3: memref<128x256xbf16, #tpu.memory_space<vmem>>, %arg4: memref<128x256xbf16, #tpu.memory_space<vmem>>, %arg5: memref<256x128xbf16, #tpu.memory_space<vmem>>, %arg6: memref<128x128xbf16, #tpu.memory_space<vmem>>, %arg7: memref<8x128xf32, #tpu.memory_space<vmem>>, %arg8: memref<16x128xf32, #tpu.memory_space<vmem>>, %arg9: memref<16x256xbf16, #tpu.memory_space<vmem>>) attributes {dimension_semantics = [#tpu.dimension_semantics<arbitrary>], iteration_bounds = array<i64: 1>, scalar_prefetch = 0 : i64, scratch_operands = 1 : i64, tpu.core_type = #tpu.core_type<tc>, window_params = [{pipeline_mode = #tpu.pipeline_mode<synchronous>, transform_indices = @transform_0, window_bounds = array<i64: 16, 128>}, {pipeline_mode = #tpu.pipeline_mode<synchronous>, transform_indices = @transform_1, window_bounds = array<i64: 128, 256>}, {pipeline_mode = #tpu.pipeline_mode<synchronous>, transform_indices = @transform_2, window_bounds = array<i64: 128, 256>}, {pipeline_mode = #tpu.pipeline_mode<synchronous>, transform_indices = @transform_3, window_bounds = array<i64: 128, 256>}, {pipeline_mode = #tpu.pipeline_mode<synchronous>, transform_indices = @transform_4, window_bounds = array<i64: 256, 128>}, {pipeline_mode = #tpu.pipeline_mode<synchronous>, transform_indices = @transform_5, window_bounds = array<i64: 128, 128>}, {pipeline_mode = #tpu.pipeline_mode<synchronous>, transform_indices = @transform_6, window_bounds = array<i64: 8, 128>}, {pipeline_mode = #tpu.pipeline_mode<synchronous>, transform_indices = @transform_7, window_bounds = array<i64: 16, 128>}]} {
    %c0 = arith.constant 0 : index
    %c0_0 = arith.constant 0 : index
    %0 = vector.load %arg1[%c0, %c0_0] : memref<16x128xbf16, #tpu.memory_space<vmem>>, vector<16x128xbf16>
    %1 = arith.extf %0 : vector<16x128xbf16> to vector<16x128xf32>
    %c0_1 = arith.constant 0 : index
    %c0_2 = arith.constant 0 : index
    %2 = vector.load %arg2[%c0_1, %c0_2] : memref<128x256xbf16, #tpu.memory_space<vmem>>, vector<128x256xbf16>
    %cst = arith.constant dense<0.000000e+00> : vector<16x256xf32>
    %3 = tpu.matmul %0, %2, %cst {dimension_numbers = #tpu.dot_dimension_numbers<[1], [0], [0], [1], [0, 0, 1, 1], [], []>} : vector<16x128xbf16>, vector<128x256xbf16>, vector<16x256xf32> -> vector<16x256xf32>
    %c0_3 = arith.constant 0 : index
    %c0_4 = arith.constant 0 : index
    %4 = vector.load %arg3[%c0_3, %c0_4] : memref<128x256xbf16, #tpu.memory_space<vmem>>, vector<128x256xbf16>
    %cst_5 = arith.constant dense<0.000000e+00> : vector<16x256xf32>
    %5 = tpu.matmul %0, %4, %cst_5 {dimension_numbers = #tpu.dot_dimension_numbers<[1], [0], [0], [1], [0, 0, 1, 1], [], []>} : vector<16x128xbf16>, vector<128x256xbf16>, vector<16x256xf32> -> vector<16x256xf32>
    %c0_6 = arith.constant 0 : index
    %c0_7 = arith.constant 0 : index
    %6 = vector.load %arg4[%c0_6, %c0_7] : memref<128x256xbf16, #tpu.memory_space<vmem>>, vector<128x256xbf16>
    %cst_8 = arith.constant dense<0.000000e+00> : vector<16x256xf32>
    %7 = tpu.matmul %0, %6, %cst_8 {dimension_numbers = #tpu.dot_dimension_numbers<[1], [0], [0], [1], [0, 0, 1, 1], [], []>} : vector<16x128xbf16>, vector<128x256xbf16>, vector<16x256xf32> -> vector<16x256xf32>
    %8 = vector.extract_strided_slice %3 {offsets = [0, 0], sizes = [8, 128], strides = [1, 1]} : vector<16x256xf32> to vector<8x128xf32>
    %9 = arith.truncf %8 : vector<8x128xf32> to vector<8x128xbf16>
    %10 = vector.extract_strided_slice %5 {offsets = [0, 0], sizes = [8, 128], strides = [1, 1]} : vector<16x256xf32> to vector<8x128xf32>
    %11 = arith.truncf %10 : vector<8x128xf32> to vector<8x128xbf16>
    %12 = vector.extract_strided_slice %7 {offsets = [0, 0], sizes = [8, 128], strides = [1, 1]} : vector<16x256xf32> to vector<8x128xf32>
    %13 = arith.truncf %12 : vector<8x128xf32> to vector<8x128xbf16>
    %cst_9 = arith.constant dense<0.000000e+00> : vector<8x8xf32>
    %14 = tpu.matmul %9, %11, %cst_9 {dimension_numbers = #tpu.dot_dimension_numbers<[1], [1], [0], [0], [0, 0, 1, 0], [], []>} : vector<8x128xbf16>, vector<8x128xbf16>, vector<8x8xf32> -> vector<8x8xf32>
    %cst_10 = arith.constant dense<0xFF800000> : vector<8xf32>
    %15 = vector.multi_reduction <maximumf>, %14, %cst_10 [1] : vector<8x8xf32> to vector<8xf32>
    %16 = vector.shape_cast %15 : vector<8xf32> to vector<8x1xf32>
    %17 = vector.broadcast %16 : vector<8x1xf32> to vector<8x8xf32>
    %18 = arith.subf %14, %17 : vector<8x8xf32>
    %19 = math.exp %18 : vector<8x8xf32>
    %cst_11 = arith.constant dense<0.000000e+00> : vector<8xf32>
    %20 = vector.multi_reduction <add>, %19, %cst_11 [1] : vector<8x8xf32> to vector<8xf32>
    %21 = vector.shape_cast %20 : vector<8xf32> to vector<8x1xf32>
    %22 = tpu.reciprocal %21 {approx = true} : vector<8x1xf32> -> vector<8x1xf32>
    %23 = vector.broadcast %22 : vector<8x1xf32> to vector<8x8xf32>
    %24 = arith.mulf %19, %23 : vector<8x8xf32>
    %25 = arith.truncf %24 : vector<8x8xf32> to vector<8x8xbf16>
    %cst_12 = arith.constant dense<0.000000e+00> : vector<8x128xf32>
    %26 = tpu.matmul %25, %13, %cst_12 {dimension_numbers = #tpu.dot_dimension_numbers<[1], [0], [0], [1], [0, 0, 1, 1], [], []>} : vector<8x8xbf16>, vector<8x128xbf16>, vector<8x128xf32> -> vector<8x128xf32>
    %27 = vector.extract_strided_slice %3 {offsets = [8, 0], sizes = [8, 128], strides = [1, 1]} : vector<16x256xf32> to vector<8x128xf32>
    %28 = arith.truncf %27 : vector<8x128xf32> to vector<8x128xbf16>
    %29 = vector.extract_strided_slice %5 {offsets = [8, 0], sizes = [8, 128], strides = [1, 1]} : vector<16x256xf32> to vector<8x128xf32>
    %30 = arith.truncf %29 : vector<8x128xf32> to vector<8x128xbf16>
    %31 = vector.extract_strided_slice %7 {offsets = [8, 0], sizes = [8, 128], strides = [1, 1]} : vector<16x256xf32> to vector<8x128xf32>
    %32 = arith.truncf %31 : vector<8x128xf32> to vector<8x128xbf16>
    %cst_13 = arith.constant dense<0.000000e+00> : vector<8x8xf32>
    %33 = tpu.matmul %28, %30, %cst_13 {dimension_numbers = #tpu.dot_dimension_numbers<[1], [1], [0], [0], [0, 0, 1, 0], [], []>} : vector<8x128xbf16>, vector<8x128xbf16>, vector<8x8xf32> -> vector<8x8xf32>
    %cst_14 = arith.constant dense<0xFF800000> : vector<8xf32>
    %34 = vector.multi_reduction <maximumf>, %33, %cst_14 [1] : vector<8x8xf32> to vector<8xf32>
    %35 = vector.shape_cast %34 : vector<8xf32> to vector<8x1xf32>
    %36 = vector.broadcast %35 : vector<8x1xf32> to vector<8x8xf32>
    %37 = arith.subf %33, %36 : vector<8x8xf32>
    %38 = math.exp %37 : vector<8x8xf32>
    %cst_15 = arith.constant dense<0.000000e+00> : vector<8xf32>
    %39 = vector.multi_reduction <add>, %38, %cst_15 [1] : vector<8x8xf32> to vector<8xf32>
    %40 = vector.shape_cast %39 : vector<8xf32> to vector<8x1xf32>
    %41 = tpu.reciprocal %40 {approx = true} : vector<8x1xf32> -> vector<8x1xf32>
    %42 = vector.broadcast %41 : vector<8x1xf32> to vector<8x8xf32>
    %43 = arith.mulf %38, %42 : vector<8x8xf32>
    %44 = arith.truncf %43 : vector<8x8xf32> to vector<8x8xbf16>
    %cst_16 = arith.constant dense<0.000000e+00> : vector<8x128xf32>
    %45 = tpu.matmul %44, %32, %cst_16 {dimension_numbers = #tpu.dot_dimension_numbers<[1], [0], [0], [1], [0, 0, 1, 1], [], []>} : vector<8x8xbf16>, vector<8x128xbf16>, vector<8x128xf32> -> vector<8x128xf32>
    %46 = tpu.concatenate %26, %45 in 0 : vector<8x128xf32>, vector<8x128xf32> -> vector<16x128xf32>
    %47 = arith.truncf %46 : vector<16x128xf32> to vector<16x128xbf16>
    %c0_17 = arith.constant 0 : index
    %c0_18 = arith.constant 0 : index
    %48 = vector.load %arg9[%c0_17, %c0_18] : memref<16x256xbf16, #tpu.memory_space<vmem>>, vector<16x128xbf16>
    tpu.vector_store %arg9[%c0_17, %c0_18], %47 {strides = array<i32>} : memref<16x256xbf16, #tpu.memory_space<vmem>>, vector<16x128xbf16>,
    %49 = vector.extract_strided_slice %3 {offsets = [0, 128], sizes = [8, 128], strides = [1, 1]} : vector<16x256xf32> to vector<8x128xf32>
    %50 = arith.truncf %49 : vector<8x128xf32> to vector<8x128xbf16>
    %51 = vector.extract_strided_slice %5 {offsets = [0, 128], sizes = [8, 128], strides = [1, 1]} : vector<16x256xf32> to vector<8x128xf32>
    %52 = arith.truncf %51 : vector<8x128xf32> to vector<8x128xbf16>
    %53 = vector.extract_strided_slice %7 {offsets = [0, 128], sizes = [8, 128], strides = [1, 1]} : vector<16x256xf32> to vector<8x128xf32>
    %54 = arith.truncf %53 : vector<8x128xf32> to vector<8x128xbf16>
    %cst_19 = arith.constant dense<0.000000e+00> : vector<8x8xf32>
    %55 = tpu.matmul %50, %52, %cst_19 {dimension_numbers = #tpu.dot_dimension_numbers<[1], [1], [0], [0], [0, 0, 1, 0], [], []>} : vector<8x128xbf16>, vector<8x128xbf16>, vector<8x8xf32> -> vector<8x8xf32>
    %cst_20 = arith.constant dense<0xFF800000> : vector<8xf32>
    %56 = vector.multi_reduction <maximumf>, %55, %cst_20 [1] : vector<8x8xf32> to vector<8xf32>
    %57 = vector.shape_cast %56 : vector<8xf32> to vector<8x1xf32>
    %58 = vector.broadcast %57 : vector<8x1xf32> to vector<8x8xf32>
    %59 = arith.subf %55, %58 : vector<8x8xf32>
    %60 = math.exp %59 : vector<8x8xf32>
    %cst_21 = arith.constant dense<0.000000e+00> : vector<8xf32>
    %61 = vector.multi_reduction <add>, %60, %cst_21 [1] : vector<8x8xf32> to vector<8xf32>
    %62 = vector.shape_cast %61 : vector<8xf32> to vector<8x1xf32>
    %63 = tpu.reciprocal %62 {approx = true} : vector<8x1xf32> -> vector<8x1xf32>
    %64 = vector.broadcast %63 : vector<8x1xf32> to vector<8x8xf32>
    %65 = arith.mulf %60, %64 : vector<8x8xf32>
    %66 = arith.truncf %65 : vector<8x8xf32> to vector<8x8xbf16>
    %cst_22 = arith.constant dense<0.000000e+00> : vector<8x128xf32>
    %67 = tpu.matmul %66, %54, %cst_22 {dimension_numbers = #tpu.dot_dimension_numbers<[1], [0], [0], [1], [0, 0, 1, 1], [], []>} : vector<8x8xbf16>, vector<8x128xbf16>, vector<8x128xf32> -> vector<8x128xf32>
    %68 = vector.extract_strided_slice %3 {offsets = [8, 128], sizes = [8, 128], strides = [1, 1]} : vector<16x256xf32> to vector<8x128xf32>
    %69 = arith.truncf %68 : vector<8x128xf32> to vector<8x128xbf16>
    %70 = vector.extract_strided_slice %5 {offsets = [8, 128], sizes = [8, 128], strides = [1, 1]} : vector<16x256xf32> to vector<8x128xf32>
    %71 = arith.truncf %70 : vector<8x128xf32> to vector<8x128xbf16>
    %72 = vector.extract_strided_slice %7 {offsets = [8, 128], sizes = [8, 128], strides = [1, 1]} : vector<16x256xf32> to vector<8x128xf32>
    %73 = arith.truncf %72 : vector<8x128xf32> to vector<8x128xbf16>
    %cst_23 = arith.constant dense<0.000000e+00> : vector<8x8xf32>
    %74 = tpu.matmul %69, %71, %cst_23 {dimension_numbers = #tpu.dot_dimension_numbers<[1], [1], [0], [0], [0, 0, 1, 0], [], []>} : vector<8x128xbf16>, vector<8x128xbf16>, vector<8x8xf32> -> vector<8x8xf32>
    %cst_24 = arith.constant dense<0xFF800000> : vector<8xf32>
    %75 = vector.multi_reduction <maximumf>, %74, %cst_24 [1] : vector<8x8xf32> to vector<8xf32>
    %76 = vector.shape_cast %75 : vector<8xf32> to vector<8x1xf32>
    %77 = vector.broadcast %76 : vector<8x1xf32> to vector<8x8xf32>
    %78 = arith.subf %74, %77 : vector<8x8xf32>
    %79 = math.exp %78 : vector<8x8xf32>
    %cst_25 = arith.constant dense<0.000000e+00> : vector<8xf32>
    %80 = vector.multi_reduction <add>, %79, %cst_25 [1] : vector<8x8xf32> to vector<8xf32>
    %81 = vector.shape_cast %80 : vector<8xf32> to vector<8x1xf32>
    %82 = tpu.reciprocal %81 {approx = true} : vector<8x1xf32> -> vector<8x1xf32>
    %83 = vector.broadcast %82 : vector<8x1xf32> to vector<8x8xf32>
    %84 = arith.mulf %79, %83 : vector<8x8xf32>
    %85 = arith.truncf %84 : vector<8x8xf32> to vector<8x8xbf16>
    %cst_26 = arith.constant dense<0.000000e+00> : vector<8x128xf32>
    %86 = tpu.matmul %85, %73, %cst_26 {dimension_numbers = #tpu.dot_dimension_numbers<[1], [0], [0], [1], [0, 0, 1, 1], [], []>} : vector<8x8xbf16>, vector<8x128xbf16>, vector<8x128xf32> -> vector<8x128xf32>
    %87 = tpu.concatenate %67, %86 in 0 : vector<8x128xf32>, vector<8x128xf32> -> vector<16x128xf32>
    %88 = arith.truncf %87 : vector<16x128xf32> to vector<16x128xbf16>
    %c0_27 = arith.constant 0 : index
    %c128 = arith.constant 128 : index
    %89 = vector.load %arg9[%c0_27, %c128] : memref<16x256xbf16, #tpu.memory_space<vmem>>, vector<16x128xbf16>
    tpu.vector_store %arg9[%c0_27, %c128], %88 {strides = array<i32>} : memref<16x256xbf16, #tpu.memory_space<vmem>>, vector<16x128xbf16>,
    %c0_28 = arith.constant 0 : index
    %c0_29 = arith.constant 0 : index
    %90 = vector.load %arg9[%c0_28, %c0_29] : memref<16x256xbf16, #tpu.memory_space<vmem>>, vector<16x256xbf16>
    %c0_30 = arith.constant 0 : index
    %c0_31 = arith.constant 0 : index
    %91 = vector.load %arg5[%c0_30, %c0_31] : memref<256x128xbf16, #tpu.memory_space<vmem>>, vector<256x128xbf16>
    %cst_32 = arith.constant dense<0.000000e+00> : vector<16x128xf32>
    %92 = tpu.matmul %90, %91, %cst_32 {dimension_numbers = #tpu.dot_dimension_numbers<[1], [0], [0], [1], [0, 0, 1, 1], [], []>} : vector<16x256xbf16>, vector<256x128xbf16>, vector<16x128xf32> -> vector<16x128xf32>
    %93 = tpu.iota {dimensions = array<i32: 0>} : vector<16x128xi32>
    %c8_i32 = arith.constant 8 : i32
    %c0_i32 = arith.constant 0 : i32
    %94 = arith.cmpi eq, %c8_i32, %c0_i32 : i32
    %c1_i32 = arith.constant 1 : i32
    %95 = arith.select %94, %c1_i32, %c8_i32 : i32
    %96 = vector.broadcast %95 : i32 to vector<16x128xi32>
    %97 = arith.remsi %93, %96 : vector<16x128xi32>
    %c0_i32_33 = arith.constant 0 : i32
    %98 = vector.broadcast %c0_i32_33 : i32 to vector<16x128xi32>
    %99 = arith.cmpi ne, %97, %98 : vector<16x128xi32>
    %c0_i32_34 = arith.constant 0 : i32
    %100 = vector.broadcast %c0_i32_34 : i32 to vector<16x128xi32>
    %101 = arith.cmpi slt, %97, %100 : vector<16x128xi32>
    %c0_i32_35 = arith.constant 0 : i32
    %102 = arith.cmpi slt, %95, %c0_i32_35 : i32
    %103 = vector.broadcast %102 : i1 to vector<16x128xi1>
    %104 = vector.broadcast %103 : vector<16x128xi1> to vector<16x128xi1>
    %105 = arith.xori %101, %104 : vector<16x128xi1>
    %106 = arith.andi %105, %99 : vector<16x128xi1>
    %107 = vector.broadcast %95 : i32 to vector<16x128xi32>
    %108 = arith.addi %97, %107 : vector<16x128xi32>
    %109 = arith.select %106, %108, %97 : vector<16x128xi1>, vector<16x128xi32>
    %110 = tpu.iota {dimensions = array<i32: 1>} : vector<16x128xi32>
    %111 = arith.cmpi sgt, %110, %109 : vector<16x128xi32>
    %cst_36 = arith.constant -1.000000e+09 : f32
    %112 = vector.broadcast %cst_36 : f32 to vector<16x128xf32>
    %113 = arith.select %111, %112, %92 : vector<16x128xi1>, vector<16x128xf32>
    %c0_37 = arith.constant 0 : index
    %c0_38 = arith.constant 0 : index
    %114 = vector.load %arg7[%c0_37, %c0_38] : memref<8x128xf32, #tpu.memory_space<vmem>>, vector<1x128xf32>
    %c1 = arith.constant 1 : index
    %c0_39 = arith.constant 0 : index
    %115 = vector.load %arg7[%c1, %c0_39] : memref<8x128xf32, #tpu.memory_space<vmem>>, vector<1x128xf32>
    %c2 = arith.constant 2 : index
    %c0_40 = arith.constant 0 : index
    %116 = vector.load %arg7[%c2, %c0_40] : memref<8x128xf32, #tpu.memory_space<vmem>>, vector<1x128xf32>
    %c3 = arith.constant 3 : index
    %c0_41 = arith.constant 0 : index
    %117 = vector.load %arg7[%c3, %c0_41] : memref<8x128xf32, #tpu.memory_space<vmem>>, vector<1x128xf32>
    %c4 = arith.constant 4 : index
    %c0_42 = arith.constant 0 : index
    %118 = vector.load %arg7[%c4, %c0_42] : memref<8x128xf32, #tpu.memory_space<vmem>>, vector<1x128xf32>
    %119 = arith.addf %1, %113 : vector<16x128xf32>
    %cst_43 = arith.constant dense<0.000000e+00> : vector<16xf32>
    %120 = vector.multi_reduction <add>, %119, %cst_43 [1] : vector<16x128xf32> to vector<16xf32>
    %121 = vector.shape_cast %120 : vector<16xf32> to vector<16x1xf32>
    %cst_44 = arith.constant 1.280000e+02 : f32
    %122 = vector.broadcast %cst_44 : f32 to vector<16x1xf32>
    %123 = arith.divf %121, %122 : vector<16x1xf32>
    %124 = vector.broadcast %123 : vector<16x1xf32> to vector<16x128xf32>
    %125 = arith.subf %119, %124 : vector<16x128xf32>
    %126 = arith.mulf %125, %125 : vector<16x128xf32>
    %cst_45 = arith.constant dense<0.000000e+00> : vector<16xf32>
    %127 = vector.multi_reduction <add>, %126, %cst_45 [1] : vector<16x128xf32> to vector<16xf32>
    %128 = vector.shape_cast %127 : vector<16xf32> to vector<16x1xf32>
    %cst_46 = arith.constant 1.280000e+02 : f32
    %129 = vector.broadcast %cst_46 : f32 to vector<16x1xf32>
    %130 = arith.divf %128, %129 : vector<16x1xf32>
    %cst_47 = arith.constant 9.99999974E-6 : f32
    %131 = vector.broadcast %cst_47 : f32 to vector<16x1xf32>
    %132 = arith.addf %130, %131 : vector<16x1xf32>
    %133 = math.rsqrt %132 : vector<16x1xf32>
    %134 = vector.broadcast %133 : vector<16x1xf32> to vector<16x128xf32>
    %135 = arith.mulf %125, %134 : vector<16x128xf32>
    %136 = vector.broadcast %114 : vector<1x128xf32> to vector<16x128xf32>
    %137 = arith.mulf %135, %136 : vector<16x128xf32>
    %138 = vector.broadcast %115 : vector<1x128xf32> to vector<16x128xf32>
    %139 = arith.addf %137, %138 : vector<16x128xf32>
    %140 = arith.truncf %139 : vector<16x128xf32> to vector<16x128xbf16>
    %c0_48 = arith.constant 0 : index
    %c0_49 = arith.constant 0 : index
    %141 = vector.load %arg6[%c0_48, %c0_49] : memref<128x128xbf16, #tpu.memory_space<vmem>>, vector<128x128xbf16>
    %cst_50 = arith.constant dense<0.000000e+00> : vector<16x128xf32>
    %142 = tpu.matmul %140, %141, %cst_50 {dimension_numbers = #tpu.dot_dimension_numbers<[1], [0], [0], [1], [0, 0, 1, 1], [], []>} : vector<16x128xbf16>, vector<128x128xbf16>, vector<16x128xf32> -> vector<16x128xf32>
    %143 = vector.broadcast %116 : vector<1x128xf32> to vector<16x128xf32>
    %144 = arith.addf %142, %143 : vector<16x128xf32>
    %145 = arith.addf %139, %144 : vector<16x128xf32>
    %cst_51 = arith.constant dense<0.000000e+00> : vector<16xf32>
    %146 = vector.multi_reduction <add>, %145, %cst_51 [1] : vector<16x128xf32> to vector<16xf32>
    %147 = vector.shape_cast %146 : vector<16xf32> to vector<16x1xf32>
    %cst_52 = arith.constant 1.280000e+02 : f32
    %148 = vector.broadcast %cst_52 : f32 to vector<16x1xf32>
    %149 = arith.divf %147, %148 : vector<16x1xf32>
    %150 = vector.broadcast %149 : vector<16x1xf32> to vector<16x128xf32>
    %151 = arith.subf %145, %150 : vector<16x128xf32>
    %152 = arith.mulf %151, %151 : vector<16x128xf32>
    %cst_53 = arith.constant dense<0.000000e+00> : vector<16xf32>
    %153 = vector.multi_reduction <add>, %152, %cst_53 [1] : vector<16x128xf32> to vector<16xf32>
    %154 = vector.shape_cast %153 : vector<16xf32> to vector<16x1xf32>
    %cst_54 = arith.constant 1.280000e+02 : f32
    %155 = vector.broadcast %cst_54 : f32 to vector<16x1xf32>
    %156 = arith.divf %154, %155 : vector<16x1xf32>
    %cst_55 = arith.constant 9.99999974E-6 : f32
    %157 = vector.broadcast %cst_55 : f32 to vector<16x1xf32>
    %158 = arith.addf %156, %157 : vector<16x1xf32>
    %159 = math.rsqrt %158 : vector<16x1xf32>
    %160 = vector.broadcast %159 : vector<16x1xf32> to vector<16x128xf32>
    %161 = arith.mulf %151, %160 : vector<16x128xf32>
    %162 = vector.broadcast %117 : vector<1x128xf32> to vector<16x128xf32>
    %163 = arith.mulf %161, %162 : vector<16x128xf32>
    %164 = vector.broadcast %118 : vector<1x128xf32> to vector<16x128xf32>
    %165 = arith.addf %163, %164 : vector<16x128xf32>
    %c0_56 = arith.constant 0 : index
    %c0_57 = arith.constant 0 : index
    %166 = vector.load %arg8[%c0_56, %c0_57] : memref<16x128xf32, #tpu.memory_space<vmem>>, vector<16x128xf32>
    tpu.vector_store %arg8[%c0_56, %c0_57], %165 {strides = array<i32>} : memref<16x128xf32, #tpu.memory_space<vmem>>, vector<16x128xf32>,
    return
  }
  func.func @transform_0(%arg0: i32) -> (i32, i32) {
    %c0_i32 = arith.constant 0 : i32
    %c0_i32_0 = arith.constant 0 : i32
    %c0_i32_1 = arith.constant 0 : i32
    return %c0_i32, %c0_i32_0 : i32, i32
  }
  func.func @transform_1(%arg0: i32) -> (i32, i32) {
    %c0_i32 = arith.constant 0 : i32
    %c0_i32_0 = arith.constant 0 : i32
    %c0_i32_1 = arith.constant 0 : i32
    return %c0_i32, %c0_i32_0 : i32, i32
  }
  func.func @transform_2(%arg0: i32) -> (i32, i32) {
    %c0_i32 = arith.constant 0 : i32
    %c0_i32_0 = arith.constant 0 : i32
    %c0_i32_1 = arith.constant 0 : i32
    return %c0_i32, %c0_i32_0 : i32, i32
  }
  func.func @transform_3(%arg0: i32) -> (i32, i32) {
    %c0_i32 = arith.constant 0 : i32
    %c0_i32_0 = arith.constant 0 : i32
    %c0_i32_1 = arith.constant 0 : i32
    return %c0_i32, %c0_i32_0 : i32, i32
  }
  func.func @transform_4(%arg0: i32) -> (i32, i32) {
    %c0_i32 = arith.constant 0 : i32
    %c0_i32_0 = arith.constant 0 : i32
    %c0_i32_1 = arith.constant 0 : i32
    return %c0_i32, %c0_i32_0 : i32, i32
  }
  func.func @transform_5(%arg0: i32) -> (i32, i32) {
    %c0_i32 = arith.constant 0 : i32
    %c0_i32_0 = arith.constant 0 : i32
    %c0_i32_1 = arith.constant 0 : i32
    return %c0_i32, %c0_i32_0 : i32, i32
  }
  func.func @transform_6(%arg0: i32) -> (i32, i32) {
    %c0_i32 = arith.constant 0 : i32
    %c0_i32_0 = arith.constant 0 : i32
    %c0_i32_1 = arith.constant 0 : i32
    return %c0_i32, %c0_i32_0 : i32, i32
  }
  func.func @transform_7(%arg0: i32) -> (i32, i32) {
    %c0_i32 = arith.constant 0 : i32
    %c0_i32_0 = arith.constant 0 : i32
    %c0_i32_1 = arith.constant 0 : i32
    return %c0_i32, %c0_i32_0 : i32, i32
  }
}

module attributes {stable_mosaic.version = 11 : i64} {
  func.func @decoder_layer_kernel(%arg0: i32, %arg1: memref<16x128xbf16, #tpu.memory_space<vmem>>, %arg2: memref<128x256xbf16, #tpu.memory_space<vmem>>, %arg3: memref<128x256xbf16, #tpu.memory_space<vmem>>, %arg4: memref<128x256xbf16, #tpu.memory_space<vmem>>, %arg5: memref<256x128xbf16, #tpu.memory_space<vmem>>, %arg6: memref<128x128xbf16, #tpu.memory_space<vmem>>, %arg7: memref<8x128xf32, #tpu.memory_space<vmem>>, %arg8: memref<16x128xf32, #tpu.memory_space<vmem>>, %arg9: memref<16x256xbf16, #tpu.memory_space<vmem>>) attributes {dimension_semantics = [#tpu.dimension_semantics<arbitrary>], iteration_bounds = array<i64: 1>, scalar_prefetch = 0 : i64, scratch_operands = 1 : i64, tpu.core_type = #tpu.core_type<tc>, window_params = [{pipeline_mode = #tpu.pipeline_mode<synchronous>, transform_indices = @transform_0, window_bounds = array<i64: 16, 128>}, {pipeline_mode = #tpu.pipeline_mode<synchronous>, transform_indices = @transform_1, window_bounds = array<i64: 128, 256>}, {pipeline_mode = #tpu.pipeline_mode<synchronous>, transform_indices = @transform_2, window_bounds = array<i64: 128, 256>}, {pipeline_mode = #tpu.pipeline_mode<synchronous>, transform_indices = @transform_3, window_bounds = array<i64: 128, 256>}, {pipeline_mode = #tpu.pipeline_mode<synchronous>, transform_indices = @transform_4, window_bounds = array<i64: 256, 128>}, {pipeline_mode = #tpu.pipeline_mode<synchronous>, transform_indices = @transform_5, window_bounds = array<i64: 128, 128>}, {pipeline_mode = #tpu.pipeline_mode<synchronous>, transform_indices = @transform_6, window_bounds = array<i64: 8, 128>}, {pipeline_mode = #tpu.pipeline_mode<synchronous>, transform_indices = @transform_7, window_bounds = array<i64: 16, 128>}]} {
    %c0 = arith.constant 0 : index
    %c0_0 = arith.constant 0 : index
    %0 = vector.load %arg1[%c0, %c0_0] : memref<16x128xbf16, #tpu.memory_space<vmem>>, vector<16x128xbf16>
    %1 = arith.extf %0 : vector<16x128xbf16> to vector<16x128xf32>
    %c0_1 = arith.constant 0 : index
    %c0_2 = arith.constant 0 : index
    %2 = vector.load %arg2[%c0_1, %c0_2] : memref<128x256xbf16, #tpu.memory_space<vmem>>, vector<128x256xbf16>
    %cst = arith.constant dense<0.000000e+00> : vector<16x256xf32>
    %3 = tpu.matmul %0, %2, %cst {dimension_numbers = #tpu.dot_dimension_numbers<[1], [0], [0], [1], [0, 0, 1, 1], [], []>} : vector<16x128xbf16>, vector<128x256xbf16>, vector<16x256xf32> -> vector<16x256xf32>
    %c0_3 = arith.constant 0 : index
    %c0_4 = arith.constant 0 : index
    %4 = vector.load %arg3[%c0_3, %c0_4] : memref<128x256xbf16, #tpu.memory_space<vmem>>, vector<128x256xbf16>
    %cst_5 = arith.constant dense<0.000000e+00> : vector<16x256xf32>
    %5 = tpu.matmul %0, %4, %cst_5 {dimension_numbers = #tpu.dot_dimension_numbers<[1], [0], [0], [1], [0, 0, 1, 1], [], []>} : vector<16x128xbf16>, vector<128x256xbf16>, vector<16x256xf32> -> vector<16x256xf32>
    %c0_6 = arith.constant 0 : index
    %c0_7 = arith.constant 0 : index
    %6 = vector.load %arg4[%c0_6, %c0_7] : memref<128x256xbf16, #tpu.memory_space<vmem>>, vector<128x256xbf16>
    %cst_8 = arith.constant dense<0.000000e+00> : vector<16x256xf32>
    %7 = tpu.matmul %0, %6, %cst_8 {dimension_numbers = #tpu.dot_dimension_numbers<[1], [0], [0], [1], [0, 0, 1, 1], [], []>} : vector<16x128xbf16>, vector<128x256xbf16>, vector<16x256xf32> -> vector<16x256xf32>
    %8 = vector.extract_strided_slice %3 {offsets = [0, 0], sizes = [8, 128], strides = [1, 1]} : vector<16x256xf32> to vector<8x128xf32>
    %9 = arith.truncf %8 : vector<8x128xf32> to vector<8x128xbf16>
    %10 = vector.extract_strided_slice %5 {offsets = [0, 0], sizes = [8, 128], strides = [1, 1]} : vector<16x256xf32> to vector<8x128xf32>
    %11 = arith.truncf %10 : vector<8x128xf32> to vector<8x128xbf16>
    %12 = vector.extract_strided_slice %7 {offsets = [0, 0], sizes = [8, 128], strides = [1, 1]} : vector<16x256xf32> to vector<8x128xf32>
    %13 = arith.truncf %12 : vector<8x128xf32> to vector<8x128xbf16>
    %cst_9 = arith.constant dense<0.000000e+00> : vector<8x8xf32>
    %14 = tpu.matmul %9, %11, %cst_9 {dimension_numbers = #tpu.dot_dimension_numbers<[1], [1], [0], [0], [0, 0, 1, 0], [], []>} : vector<8x128xbf16>, vector<8x128xbf16>, vector<8x8xf32> -> vector<8x8xf32>
    %cst_10 = arith.constant dense<0xFF800000> : vector<8xf32>
    %15 = vector.multi_reduction <maximumf>, %14, %cst_10 [1] : vector<8x8xf32> to vector<8xf32>
    %16 = vector.shape_cast %15 : vector<8xf32> to vector<8x1xf32>
    %17 = vector.broadcast %16 : vector<8x1xf32> to vector<8x8xf32>
    %18 = arith.subf %14, %17 : vector<8x8xf32>
    %19 = math.exp %18 : vector<8x8xf32>
    %cst_11 = arith.constant dense<0.000000e+00> : vector<8xf32>
    %20 = vector.multi_reduction <add>, %19, %cst_11 [1] : vector<8x8xf32> to vector<8xf32>
    %21 = vector.shape_cast %20 : vector<8xf32> to vector<8x1xf32>
    %22 = tpu.reciprocal %21 {approx = true} : vector<8x1xf32> -> vector<8x1xf32>
    %23 = vector.broadcast %22 : vector<8x1xf32> to vector<8x8xf32>
    %24 = arith.mulf %19, %23 : vector<8x8xf32>
    %25 = arith.truncf %24 : vector<8x8xf32> to vector<8x8xbf16>
    %cst_12 = arith.constant dense<0.000000e+00> : vector<8x128xf32>
    %26 = tpu.matmul %25, %13, %cst_12 {dimension_numbers = #tpu.dot_dimension_numbers<[1], [0], [0], [1], [0, 0, 1, 1], [], []>} : vector<8x8xbf16>, vector<8x128xbf16>, vector<8x128xf32> -> vector<8x128xf32>
    %27 = vector.extract_strided_slice %3 {offsets = [8, 0], sizes = [8, 128], strides = [1, 1]} : vector<16x256xf32> to vector<8x128xf32>
    %28 = arith.truncf %27 : vector<8x128xf32> to vector<8x128xbf16>
    %29 = vector.extract_strided_slice %5 {offsets = [8, 0], sizes = [8, 128], strides = [1, 1]} : vector<16x256xf32> to vector<8x128xf32>
    %30 = arith.truncf %29 : vector<8x128xf32> to vector<8x128xbf16>
    %31 = vector.extract_strided_slice %7 {offsets = [8, 0], sizes = [8, 128], strides = [1, 1]} : vector<16x256xf32> to vector<8x128xf32>
    %32 = arith.truncf %31 : vector<8x128xf32> to vector<8x128xbf16>
    %cst_13 = arith.constant dense<0.000000e+00> : vector<8x8xf32>
    %33 = tpu.matmul %28, %30, %cst_13 {dimension_numbers = #tpu.dot_dimension_numbers<[1], [1], [0], [0], [0, 0, 1, 0], [], []>} : vector<8x128xbf16>, vector<8x128xbf16>, vector<8x8xf32> -> vector<8x8xf32>
    %cst_14 = arith.constant dense<0xFF800000> : vector<8xf32>
    %34 = vector.multi_reduction <maximumf>, %33, %cst_14 [1] : vector<8x8xf32> to vector<8xf32>
    %35 = vector.shape_cast %34 : vector<8xf32> to vector<8x1xf32>
    %36 = vector.broadcast %35 : vector<8x1xf32> to vector<8x8xf32>
    %37 = arith.subf %33, %36 : vector<8x8xf32>
    %38 = math.exp %37 : vector<8x8xf32>
    %cst_15 = arith.constant dense<0.000000e+00> : vector<8xf32>
    %39 = vector.multi_reduction <add>, %38, %cst_15 [1] : vector<8x8xf32> to vector<8xf32>
    %40 = vector.shape_cast %39 : vector<8xf32> to vector<8x1xf32>
    %41 = tpu.reciprocal %40 {approx = true} : vector<8x1xf32> -> vector<8x1xf32>
    %42 = vector.broadcast %41 : vector<8x1xf32> to vector<8x8xf32>
    %43 = arith.mulf %38, %42 : vector<8x8xf32>
    %44 = arith.truncf %43 : vector<8x8xf32> to vector<8x8xbf16>
    %cst_16 = arith.constant dense<0.000000e+00> : vector<8x128xf32>
    %45 = tpu.matmul %44, %32, %cst_16 {dimension_numbers = #tpu.dot_dimension_numbers<[1], [0], [0], [1], [0, 0, 1, 1], [], []>} : vector<8x8xbf16>, vector<8x128xbf16>, vector<8x128xf32> -> vector<8x128xf32>
    %46 = tpu.concatenate %26, %45 in 0 : vector<8x128xf32>, vector<8x128xf32> -> vector<16x128xf32>
    %47 = arith.truncf %46 : vector<16x128xf32> to vector<16x128xbf16>
    %c0_17 = arith.constant 0 : index
    %c0_18 = arith.constant 0 : index
    %48 = vector.load %arg9[%c0_17, %c0_18] : memref<16x256xbf16, #tpu.memory_space<vmem>>, vector<16x128xbf16>
    tpu.vector_store %arg9[%c0_17, %c0_18], %47 {strides = array<i32>} : memref<16x256xbf16, #tpu.memory_space<vmem>>, vector<16x128xbf16>,
    %49 = vector.extract_strided_slice %3 {offsets = [0, 128], sizes = [8, 128], strides = [1, 1]} : vector<16x256xf32> to vector<8x128xf32>
    %50 = arith.truncf %49 : vector<8x128xf32> to vector<8x128xbf16>
    %51 = vector.extract_strided_slice %5 {offsets = [0, 128], sizes = [8, 128], strides = [1, 1]} : vector<16x256xf32> to vector<8x128xf32>
    %52 = arith.truncf %51 : vector<8x128xf32> to vector<8x128xbf16>
    %53 = vector.extract_strided_slice %7 {offsets = [0, 128], sizes = [8, 128], strides = [1, 1]} : vector<16x256xf32> to vector<8x128xf32>
    %54 = arith.truncf %53 : vector<8x128xf32> to vector<8x128xbf16>
    %cst_19 = arith.constant dense<0.000000e+00> : vector<8x8xf32>
    %55 = tpu.matmul %50, %52, %cst_19 {dimension_numbers = #tpu.dot_dimension_numbers<[1], [1], [0], [0], [0, 0, 1, 0], [], []>} : vector<8x128xbf16>, vector<8x128xbf16>, vector<8x8xf32> -> vector<8x8xf32>
    %cst_20 = arith.constant dense<0xFF800000> : vector<8xf32>
    %56 = vector.multi_reduction <maximumf>, %55, %cst_20 [1] : vector<8x8xf32> to vector<8xf32>
    %57 = vector.shape_cast %56 : vector<8xf32> to vector<8x1xf32>
    %58 = vector.broadcast %57 : vector<8x1xf32> to vector<8x8xf32>
    %59 = arith.subf %55, %58 : vector<8x8xf32>
    %60 = math.exp %59 : vector<8x8xf32>
    %cst_21 = arith.constant dense<0.000000e+00> : vector<8xf32>
    %61 = vector.multi_reduction <add>, %60, %cst_21 [1] : vector<8x8xf32> to vector<8xf32>
    %62 = vector.shape_cast %61 : vector<8xf32> to vector<8x1xf32>
    %63 = tpu.reciprocal %62 {approx = true} : vector<8x1xf32> -> vector<8x1xf32>
    %64 = vector.broadcast %63 : vector<8x1xf32> to vector<8x8xf32>
    %65 = arith.mulf %60, %64 : vector<8x8xf32>
    %66 = arith.truncf %65 : vector<8x8xf32> to vector<8x8xbf16>
    %cst_22 = arith.constant dense<0.000000e+00> : vector<8x128xf32>
    %67 = tpu.matmul %66, %54, %cst_22 {dimension_numbers = #tpu.dot_dimension_numbers<[1], [0], [0], [1], [0, 0, 1, 1], [], []>} : vector<8x8xbf16>, vector<8x128xbf16>, vector<8x128xf32> -> vector<8x128xf32>
    %68 = vector.extract_strided_slice %3 {offsets = [8, 128], sizes = [8, 128], strides = [1, 1]} : vector<16x256xf32> to vector<8x128xf32>
    %69 = arith.truncf %68 : vector<8x128xf32> to vector<8x128xbf16>
    %70 = vector.extract_strided_slice %5 {offsets = [8, 128], sizes = [8, 128], strides = [1, 1]} : vector<16x256xf32> to vector<8x128xf32>
    %71 = arith.truncf %70 : vector<8x128xf32> to vector<8x128xbf16>
    %72 = vector.extract_strided_slice %7 {offsets = [8, 128], sizes = [8, 128], strides = [1, 1]} : vector<16x256xf32> to vector<8x128xf32>
    %73 = arith.truncf %72 : vector<8x128xf32> to vector<8x128xbf16>
    %cst_23 = arith.constant dense<0.000000e+00> : vector<8x8xf32>
    %74 = tpu.matmul %69, %71, %cst_23 {dimension_numbers = #tpu.dot_dimension_numbers<[1], [1], [0], [0], [0, 0, 1, 0], [], []>} : vector<8x128xbf16>, vector<8x128xbf16>, vector<8x8xf32> -> vector<8x8xf32>
    %cst_24 = arith.constant dense<0xFF800000> : vector<8xf32>
    %75 = vector.multi_reduction <maximumf>, %74, %cst_24 [1] : vector<8x8xf32> to vector<8xf32>
    %76 = vector.shape_cast %75 : vector<8xf32> to vector<8x1xf32>
    %77 = vector.broadcast %76 : vector<8x1xf32> to vector<8x8xf32>
    %78 = arith.subf %74, %77 : vector<8x8xf32>
    %79 = math.exp %78 : vector<8x8xf32>
    %cst_25 = arith.constant dense<0.000000e+00> : vector<8xf32>
    %80 = vector.multi_reduction <add>, %79, %cst_25 [1] : vector<8x8xf32> to vector<8xf32>
    %81 = vector.shape_cast %80 : vector<8xf32> to vector<8x1xf32>
    %82 = tpu.reciprocal %81 {approx = true} : vector<8x1xf32> -> vector<8x1xf32>
    %83 = vector.broadcast %82 : vector<8x1xf32> to vector<8x8xf32>
    %84 = arith.mulf %79, %83 : vector<8x8xf32>
    %85 = arith.truncf %84 : vector<8x8xf32> to vector<8x8xbf16>
    %cst_26 = arith.constant dense<0.000000e+00> : vector<8x128xf32>
    %86 = tpu.matmul %85, %73, %cst_26 {dimension_numbers = #tpu.dot_dimension_numbers<[1], [0], [0], [1], [0, 0, 1, 1], [], []>} : vector<8x8xbf16>, vector<8x128xbf16>, vector<8x128xf32> -> vector<8x128xf32>
    %87 = tpu.concatenate %67, %86 in 0 : vector<8x128xf32>, vector<8x128xf32> -> vector<16x128xf32>
    %88 = arith.truncf %87 : vector<16x128xf32> to vector<16x128xbf16>
    %c0_27 = arith.constant 0 : index
    %c128 = arith.constant 128 : index
    %89 = vector.load %arg9[%c0_27, %c128] : memref<16x256xbf16, #tpu.memory_space<vmem>>, vector<16x128xbf16>
    tpu.vector_store %arg9[%c0_27, %c128], %88 {strides = array<i32>} : memref<16x256xbf16, #tpu.memory_space<vmem>>, vector<16x128xbf16>,
    %c0_28 = arith.constant 0 : index
    %c0_29 = arith.constant 0 : index
    %90 = vector.load %arg9[%c0_28, %c0_29] : memref<16x256xbf16, #tpu.memory_space<vmem>>, vector<16x256xbf16>
    %c0_30 = arith.constant 0 : index
    %c0_31 = arith.constant 0 : index
    %91 = vector.load %arg5[%c0_30, %c0_31] : memref<256x128xbf16, #tpu.memory_space<vmem>>, vector<256x128xbf16>
    %cst_32 = arith.constant dense<0.000000e+00> : vector<16x128xf32>
    %92 = tpu.matmul %90, %91, %cst_32 {dimension_numbers = #tpu.dot_dimension_numbers<[1], [0], [0], [1], [0, 0, 1, 1], [], []>} : vector<16x256xbf16>, vector<256x128xbf16>, vector<16x128xf32> -> vector<16x128xf32>
    %93 = tpu.iota {dimensions = array<i32: 0>} : vector<16x128xi32>
    %c8_i32 = arith.constant 8 : i32
    %c0_i32 = arith.constant 0 : i32
    %94 = arith.cmpi eq, %c8_i32, %c0_i32 : i32
    %c1_i32 = arith.constant 1 : i32
    %95 = arith.select %94, %c1_i32, %c8_i32 : i32
    %96 = vector.broadcast %95 : i32 to vector<16x128xi32>
    %97 = arith.remsi %93, %96 : vector<16x128xi32>
    %c0_i32_33 = arith.constant 0 : i32
    %98 = vector.broadcast %c0_i32_33 : i32 to vector<16x128xi32>
    %99 = arith.cmpi ne, %97, %98 : vector<16x128xi32>
    %c0_i32_34 = arith.constant 0 : i32
    %100 = vector.broadcast %c0_i32_34 : i32 to vector<16x128xi32>
    %101 = arith.cmpi slt, %97, %100 : vector<16x128xi32>
    %c0_i32_35 = arith.constant 0 : i32
    %102 = arith.cmpi slt, %95, %c0_i32_35 : i32
    %103 = vector.broadcast %102 : i1 to vector<16x128xi1>
    %104 = vector.broadcast %103 : vector<16x128xi1> to vector<16x128xi1>
    %105 = arith.xori %101, %104 : vector<16x128xi1>
    %106 = arith.andi %105, %99 : vector<16x128xi1>
    %107 = vector.broadcast %95 : i32 to vector<16x128xi32>
    %108 = arith.addi %97, %107 : vector<16x128xi32>
    %109 = arith.select %106, %108, %97 : vector<16x128xi1>, vector<16x128xi32>
    %110 = tpu.iota {dimensions = array<i32: 1>} : vector<16x128xi32>
    %111 = arith.cmpi sgt, %110, %109 : vector<16x128xi32>
    %cst_36 = arith.constant -1.000000e+09 : f32
    %112 = vector.broadcast %cst_36 : f32 to vector<16x128xf32>
    %113 = arith.select %111, %112, %92 : vector<16x128xi1>, vector<16x128xf32>
    %c0_37 = arith.constant 0 : index
    %c0_38 = arith.constant 0 : index
    %114 = vector.load %arg7[%c0_37, %c0_38] : memref<8x128xf32, #tpu.memory_space<vmem>>, vector<1x128xf32>
    %c1 = arith.constant 1 : index
    %c0_39 = arith.constant 0 : index
    %115 = vector.load %arg7[%c1, %c0_39] : memref<8x128xf32, #tpu.memory_space<vmem>>, vector<1x128xf32>
    %c2 = arith.constant 2 : index
    %c0_40 = arith.constant 0 : index
    %116 = vector.load %arg7[%c2, %c0_40] : memref<8x128xf32, #tpu.memory_space<vmem>>, vector<1x128xf32>
    %c3 = arith.constant 3 : index
    %c0_41 = arith.constant 0 : index
    %117 = vector.load %arg7[%c3, %c0_41] : memref<8x128xf32, #tpu.memory_space<vmem>>, vector<1x128xf32>
    %c4 = arith.constant 4 : index
    %c0_42 = arith.constant 0 : index
    %118 = vector.load %arg7[%c4, %c0_42] : memref<8x128xf32, #tpu.memory_space<vmem>>, vector<1x128xf32>
    %119 = arith.addf %1, %113 : vector<16x128xf32>
    %cst_43 = arith.constant dense<0.000000e+00> : vector<16xf32>
    %120 = vector.multi_reduction <add>, %119, %cst_43 [1] : vector<16x128xf32> to vector<16xf32>
    %121 = vector.shape_cast %120 : vector<16xf32> to vector<16x1xf32>
    %cst_44 = arith.constant 1.280000e+02 : f32
    %122 = vector.broadcast %cst_44 : f32 to vector<16x1xf32>
    %123 = arith.divf %121, %122 : vector<16x1xf32>
    %124 = vector.broadcast %123 : vector<16x1xf32> to vector<16x128xf32>
    %125 = arith.subf %119, %124 : vector<16x128xf32>
    %126 = arith.mulf %125, %125 : vector<16x128xf32>
    %cst_45 = arith.constant dense<0.000000e+00> : vector<16xf32>
    %127 = vector.multi_reduction <add>, %126, %cst_45 [1] : vector<16x128xf32> to vector<16xf32>
    %128 = vector.shape_cast %127 : vector<16xf32> to vector<16x1xf32>
    %cst_46 = arith.constant 1.280000e+02 : f32
    %129 = vector.broadcast %cst_46 : f32 to vector<16x1xf32>
    %130 = arith.divf %128, %129 : vector<16x1xf32>
    %cst_47 = arith.constant 9.99999974E-6 : f32
    %131 = vector.broadcast %cst_47 : f32 to vector<16x1xf32>
    %132 = arith.addf %130, %131 : vector<16x1xf32>
    %133 = math.rsqrt %132 : vector<16x1xf32>
    %134 = vector.broadcast %133 : vector<16x1xf32> to vector<16x128xf32>
    %135 = arith.mulf %125, %134 : vector<16x128xf32>
    %136 = vector.broadcast %114 : vector<1x128xf32> to vector<16x128xf32>
    %137 = arith.mulf %135, %136 : vector<16x128xf32>
    %138 = vector.broadcast %115 : vector<1x128xf32> to vector<16x128xf32>
    %139 = arith.addf %137, %138 : vector<16x128xf32>
    %140 = arith.truncf %139 : vector<16x128xf32> to vector<16x128xbf16>
    %c0_48 = arith.constant 0 : index
    %c0_49 = arith.constant 0 : index
    %141 = vector.load %arg6[%c0_48, %c0_49] : memref<128x128xbf16, #tpu.memory_space<vmem>>, vector<128x128xbf16>
    %cst_50 = arith.constant dense<0.000000e+00> : vector<16x128xf32>
    %142 = tpu.matmul %140, %141, %cst_50 {dimension_numbers = #tpu.dot_dimension_numbers<[1], [0], [0], [1], [0, 0, 1, 1], [], []>} : vector<16x128xbf16>, vector<128x128xbf16>, vector<16x128xf32> -> vector<16x128xf32>
    %143 = vector.broadcast %116 : vector<1x128xf32> to vector<16x128xf32>
    %144 = arith.addf %142, %143 : vector<16x128xf32>
    %145 = arith.addf %139, %144 : vector<16x128xf32>
    %cst_51 = arith.constant dense<0.000000e+00> : vector<16xf32>
    %146 = vector.multi_reduction <add>, %145, %cst_51 [1] : vector<16x128xf32> to vector<16xf32>
    %147 = vector.shape_cast %146 : vector<16xf32> to vector<16x1xf32>
    %cst_52 = arith.constant 1.280000e+02 : f32
    %148 = vector.broadcast %cst_52 : f32 to vector<16x1xf32>
    %149 = arith.divf %147, %148 : vector<16x1xf32>
    %150 = vector.broadcast %149 : vector<16x1xf32> to vector<16x128xf32>
    %151 = arith.subf %145, %150 : vector<16x128xf32>
    %152 = arith.mulf %151, %151 : vector<16x128xf32>
    %cst_53 = arith.constant dense<0.000000e+00> : vector<16xf32>
    %153 = vector.multi_reduction <add>, %152, %cst_53 [1] : vector<16x128xf32> to vector<16xf32>
    %154 = vector.shape_cast %153 : vector<16xf32> to vector<16x1xf32>
    %cst_54 = arith.constant 1.280000e+02 : f32
    %155 = vector.broadcast %cst_54 : f32 to vector<16x1xf32>
    %156 = arith.divf %154, %155 : vector<16x1xf32>
    %cst_55 = arith.constant 9.99999974E-6 : f32
    %157 = vector.broadcast %cst_55 : f32 to vector<16x1xf32>
    %158 = arith.addf %156, %157 : vector<16x1xf32>
    %159 = math.rsqrt %158 : vector<16x1xf32>
    %160 = vector.broadcast %159 : vector<16x1xf32> to vector<16x128xf32>
    %161 = arith.mulf %151, %160 : vector<16x128xf32>
    %162 = vector.broadcast %117 : vector<1x128xf32> to vector<16x128xf32>
    %163 = arith.mulf %161, %162 : vector<16x128xf32>
    %164 = vector.broadcast %118 : vector<1x128xf32> to vector<16x128xf32>
    %165 = arith.addf %163, %164 : vector<16x128xf32>
    %c0_56 = arith.constant 0 : index
    %c0_57 = arith.constant 0 : index
    %166 = vector.load %arg8[%c0_56, %c0_57] : memref<16x128xf32, #tpu.memory_space<vmem>>, vector<16x128xf32>
    tpu.vector_store %arg8[%c0_56, %c0_57], %165 {strides = array<i32>} : memref<16x128xf32, #tpu.memory_space<vmem>>, vector<16x128xf32>,
    return
  }
  func.func @transform_0(%arg0: i32) -> (i32, i32) {
    %c0_i32 = arith.constant 0 : i32
    %c0_i32_0 = arith.constant 0 : i32
    %c0_i32_1 = arith.constant 0 : i32
    return %c0_i32, %c0_i32_0 : i32, i32
  }
  func.func @transform_1(%arg0: i32) -> (i32, i32) {
    %c0_i32 = arith.constant 0 : i32
    %c0_i32_0 = arith.constant 0 : i32
    %c0_i32_1 = arith.constant 0 : i32
    return %c0_i32, %c0_i32_0 : i32, i32
  }
  func.func @transform_2(%arg0: i32) -> (i32, i32) {
    %c0_i32 = arith.constant 0 : i32
    %c0_i32_0 = arith.constant 0 : i32
    %c0_i32_1 = arith.constant 0 : i32
    return %c0_i32, %c0_i32_0 : i32, i32
  }
  func.func @transform_3(%arg0: i32) -> (i32, i32) {
    %c0_i32 = arith.constant 0 : i32
    %c0_i32_0 = arith.constant 0 : i32
    %c0_i32_1 = arith.constant 0 : i32
    return %c0_i32, %c0_i32_0 : i32, i32
  }
  func.func @transform_4(%arg0: i32) -> (i32, i32) {
    %c0_i32 = arith.constant 0 : i32
    %c0_i32_0 = arith.constant 0 : i32
    %c0_i32_1 = arith.constant 0 : i32
    return %c0_i32, %c0_i32_0 : i32, i32
  }
  func.func @transform_5(%arg0: i32) -> (i32, i32) {
    %c0_i32 = arith.constant 0 : i32
    %c0_i32_0 = arith.constant 0 : i32
    %c0_i32_1 = arith.constant 0 : i32
    return %c0_i32, %c0_i32_0 : i32, i32
  }
  func.func @transform_6(%arg0: i32) -> (i32, i32) {
    %c0_i32 = arith.constant 0 : i32
    %c0_i32_0 = arith.constant 0 : i32
    %c0_i32_1 = arith.constant 0 : i32
    return %c0_i32, %c0_i32_0 : i32, i32
  }
  func.func @transform_7(%arg0: i32) -> (i32, i32) {
    %c0_i32 = arith.constant 0 : i32
    %c0_i32_0 = arith.constant 0 : i32
    %c0_i32_1 = arith.constant 0 : i32
    return %c0_i32, %c0_i32_0 : i32, i32
  }
}

</mosaic_0001>

<bundles_post_ra>
// kernel: tpu_custom_call.1
= control target key start
LH: loop header
LB: loop body
LE: loop exit
PB: predicated region body
PF: predicated region fallthrough
CT: control target
= control target key end

     0   :  { %12 = vsyncpa [#allocation4], 0  ;;  %s2105_s0 = inlined_call_operand.hbm [shape: bf16[16,128], index: 0, kind: input, shape index: {}]   ;;  %s2106_s1 = inlined_call_operand.hbm [shape: bf16[128,256], index: 1, kind: input, shape index: {}]   ;;  %s2107_s2 = inlined_call_operand.hbm [shape: bf16[128,256], index: 2, kind: input, shape index: {}]   ;;  %s2108_s3 = inlined_call_operand.hbm [shape: bf16[128,256], index: 3, kind: input, shape index: {}]   ;;  %s2109_s4 = inlined_call_operand.hbm [shape: bf16[256,128], index: 4, kind: input, shape index: {}]   ;;  %s2110_s5 = inlined_call_operand.hbm [shape: bf16[128,128], index: 5, kind: input, shape index: {}]   ;;  %s2111_s6 = inlined_call_operand.vmem [shape: f32[8,128], index: 6, kind: input, shape index: {}]   ;;  %s2112_s7 = inlined_call_operand.hbm [shape: f32[16,128], index: 7, kind: output, shape index: {}]  }
   0x1   :  { %13 = vsyncpa [#allocation7], 0 }
   0x2   :  { %14 = vsyncpa [#allocation10], 0 }
   0x3   :  { %15 = vsyncpa [#allocation13], 0 }
   0x4   :  { %16 = vsyncpa [#allocation5], 0  ;;  %s1858_s24 = smov [#allocation6]   ;;  %s1694_s28 = scalar_lea.hbm %s2106_s1, 2048 }
   0x5   :  { %s34_s25 = sshll.u32 %s1858_s24, 4  ;;  %p1695_p0 = scmp.ne.s32.totalorder %s2106_s1, %s1694_s28  ;;  %s35_s25 = int_to_ptr.vmem [resolvable:$true] %s34_s25 }
   0x6   :  { %p1698_p1 = scmp.lt.u32.totalorder %s1694_s28, %s2106_s1 }
   0x8   :  { %p1700_p2 = pnand %p1698_p1, %p1695_p0 }
   0xa   :  { %1703 = shalt.err (!%p1700_p2)
}
   0xb   :  { %s1704_s10 = scalar_lea.vmem %s35_s25, 2048  ;;  %p1709_p4 = scmp.lt.s32.totalorder %s35_s25, %s35_s25 }
   0xc   :  { %p1705_p3 = scmp.ne.s32.totalorder %s35_s25, %s1704_s10  ;;  %p1710_p5 = scmp.lt.s32.totalorder %s1704_s10, %s1704_s10 }
   0xe   :  { %p1711_p6 = por %p1710_p5, %p1709_p4 }
  0x10   :  { %p1712_p7 = pnand %p1711_p6, %p1705_p3 }
  0x12   :  { %1715 = shalt.err (!%p1712_p7)
}
  0x13   :  { %s1859_s11 = smov 128   ;;  %s1860_s12 = smov 8  }
  0x14   :  { %40 = dma.hbm_to_vmem [thread:$0]  %s2106_s1, 2048, %s35_s25, [#allocation7], %s1859_s11, %s1859_s11, %s1860_s12  }
  0x15   :  { %s1861_s15 = smov [#allocation9]   ;;  %s1862_s17 = smov [#allocation3]  }
  0x16   :  { %s58_s16 = sshll.u32 %s1861_s15, 4  ;;  %s22_s18 = sshll.u32 %s1862_s17, 4  ;;  %s59_s16 = int_to_ptr.vmem [resolvable:$true] %s58_s16  ;;  %s23_s18 = int_to_ptr.vmem [resolvable:$true] %s22_s18 }
  0x17   :  { %s1716_s21 = scalar_lea.hbm %s2108_s3, 2048 }
  0x18   :  { %p1717_p8 = scmp.ne.s32.totalorder %s2108_s3, %s1716_s21  ;;  %p1720_p9 = scmp.lt.u32.totalorder %s1716_s21, %s2108_s3 }
  0x1a   :  { %p1722_p10 = pnand %p1720_p9, %p1717_p8 }
  0x1c   :  { %1725 = shalt.err (!%p1722_p10)
}
  0x1d   :  { %s1726_s1 = scalar_lea.vmem %s59_s16, 2048  ;;  %p1731_p12 = scmp.lt.s32.totalorder %s59_s16, %s59_s16 }
  0x1e   :  { %p1727_p11 = scmp.ne.s32.totalorder %s59_s16, %s1726_s1  ;;  %p1732_p13 = scmp.lt.s32.totalorder %s1726_s1, %s1726_s1 }
  0x20   :  { %p1733_p0 = por %p1732_p13, %p1731_p12 }
  0x22   :  { %p1734_p1 = pnand %p1733_p0, %p1727_p11 }
  0x24   :  { %1737 = shalt.err (!%p1734_p1)
}
  0x25   :  { %64 = dma.hbm_to_vmem [thread:$0]  %s2108_s3, 2048, %s59_s16, [#allocation10], %s1859_s11, %s1859_s11, %s1860_s12  }
  0x26   :  { %s1738_s30 = scalar_lea.hbm %s2105_s0, 128 }
  0x27   :  { %p1739_p2 = scmp.ne.s32.totalorder %s2105_s0, %s1738_s30  ;;  %p1742_p3 = scmp.lt.u32.totalorder %s1738_s30, %s2105_s0 }
  0x29   :  { %p1744_p4 = pnand %p1742_p3, %p1739_p2 }
  0x2b   :  { %1747 = shalt.err (!%p1744_p4)
}
  0x2c   :  { %s1748_s14 = scalar_lea.vmem %s23_s18, 128  ;;  %p1753_p6 = scmp.lt.s32.totalorder %s23_s18, %s23_s18 }
  0x2d   :  { %p1749_p5 = scmp.ne.s32.totalorder %s23_s18, %s1748_s14  ;;  %p1754_p7 = scmp.lt.s32.totalorder %s1748_s14, %s1748_s14 }
  0x2f   :  { %p1755_p8 = por %p1754_p7, %p1753_p6 }
  0x31   :  { %p1756_p9 = pnand %p1755_p8, %p1749_p5 }
  0x33   :  { %1759 = shalt.err (!%p1756_p9)
}
  0x34   :  { %s1863_s3 = smov 64   ;;  %s1864_s15 = smov 4  }
  0x35   :  { %28 = dma.hbm_to_vmem [thread:$0]  %s2105_s0, 128, %s23_s18, [#allocation4], %s1863_s3, %s1863_s3, %s1864_s15  }
  0x36   :  { %s1865_s19 = smov [#allocation8]   ;;  %s1866_s21 = smov [#allocation11]  }
  0x37   :  { %s46_s20 = sshll.u32 %s1865_s19, 4  ;;  %s70_s22 = sshll.u32 %s1866_s21, 4  ;;  %s47_s20 = int_to_ptr.vmem [resolvable:$true] %s46_s20  ;;  %s71_s22 = int_to_ptr.vmem [resolvable:$true] %s70_s22 }
  0x38   :  { %s1760_s26 = scalar_lea.hbm %s2107_s2, 2048 }
  0x39   :  { %p1761_p10 = scmp.ne.s32.totalorder %s2107_s2, %s1760_s26  ;;  %p1764_p11 = scmp.lt.u32.totalorder %s1760_s26, %s2107_s2 }
  0x3b   :  { %p1766_p12 = pnand %p1764_p11, %p1761_p10 }
  0x3d   :  { %1769 = shalt.err (!%p1766_p12)
}
  0x3e   :  { %s1770_s0 = scalar_lea.vmem %s47_s20, 2048  ;;  %p1775_p0 = scmp.lt.s32.totalorder %s47_s20, %s47_s20 }
  0x3f   :  { %p1771_p13 = scmp.ne.s32.totalorder %s47_s20, %s1770_s0  ;;  %p1776_p1 = scmp.lt.s32.totalorder %s1770_s0, %s1770_s0 }
  0x41   :  { %p1777_p2 = por %p1776_p1, %p1775_p0 }
  0x43   :  { %p1778_p3 = pnand %p1777_p2, %p1771_p13 }
  0x45   :  { %1781 = shalt.err (!%p1778_p3)
}
  0x46   :  { %52 = dma.hbm_to_vmem [thread:$0]  %s2107_s2, 2048, %s47_s20, [#allocation7], %s1859_s11, %s1859_s11, %s1860_s12  }
  0x47   :  { %s1782_s9 = scalar_lea.hbm %s2109_s4, 2048 }
  0x48   :  { %p1783_p4 = scmp.ne.s32.totalorder %s2109_s4, %s1782_s9  ;;  %p1786_p5 = scmp.lt.u32.totalorder %s1782_s9, %s2109_s4 }
  0x4a   :  { %p1788_p6 = pnand %p1786_p5, %p1783_p4 }
  0x4c   :  { %1791 = shalt.err (!%p1788_p6)
}
  0x4d   :  { %s1792_s17 = scalar_lea.vmem %s71_s22, 2048  ;;  %p1797_p8 = scmp.lt.s32.totalorder %s71_s22, %s71_s22 }
  0x4e   :  { %p1793_p7 = scmp.ne.s32.totalorder %s71_s22, %s1792_s17  ;;  %p1798_p9 = scmp.lt.s32.totalorder %s1792_s17, %s1792_s17 }
  0x50   :  { %p1799_p10 = por %p1798_p9, %p1797_p8 }
  0x52   :  { %p1800_p11 = pnand %p1799_p10, %p1793_p7 }
  0x54   :  { %1803 = shalt.err (!%p1800_p11)
}
  0x55   :  { %76 = dma.hbm_to_vmem [thread:$0]  %s2109_s4, 2048, %s71_s22, [#allocation10], %s1863_s3, %s1863_s3, %s1864_s15  }
  0x56   :  { %s1867_s20 = smov [#allocation12]   ;;  %s1804_s26 = scalar_lea.hbm %s2110_s5, 1024 }
  0x57   :  { %s82_s21 = sshll.u32 %s1867_s20, 4  ;;  %p1805_p12 = scmp.ne.s32.totalorder %s2110_s5, %s1804_s26  ;;  %s83_s21 = int_to_ptr.vmem [resolvable:$true] %s82_s21 }
  0x58   :  { %p1808_p13 = scmp.lt.u32.totalorder %s1804_s26, %s2110_s5 }
  0x5a   :  { %p1810_p0 = pnand %p1808_p13, %p1805_p12 }
  0x5c   :  { %1813 = shalt.err (!%p1810_p0)
}
  0x5d   :  { %s1814_s0 = scalar_lea.vmem %s83_s21, 1024  ;;  %p1819_p2 = scmp.lt.s32.totalorder %s83_s21, %s83_s21 }
  0x5e   :  { %p1815_p1 = scmp.ne.s32.totalorder %s83_s21, %s1814_s0  ;;  %p1820_p3 = scmp.lt.s32.totalorder %s1814_s0, %s1814_s0 }
  0x60   :  { %p1821_p4 = por %p1820_p3, %p1819_p2 }
  0x62   :  { %p1822_p5 = pnand %p1821_p4, %p1815_p1 }
  0x64   :  { %1825 = shalt.err (!%p1822_p5)
}
  0x65   :  { %88 = dma.hbm_to_vmem [thread:$0]  %s2110_s5, 1024, %s83_s21, [#allocation13], %s1863_s3, %s1863_s3, %s1864_s15  }
  0x66   :  { %1848 = dma.done.wait [#allocation4], 128  }
  0x67   :  { %1849 = vsyncadd [#allocation4], 4294967168 }
  0x68   :  { %1850 = dma.done.wait [#allocation7], 4096  }
  0x69   :  { %1851 = vsyncadd [#allocation7], 4294963200 }
  0x6a   :  { %1852 = dma.done.wait [#allocation10], 4096  }
  0x6b   :  { %1853 = vsyncadd [#allocation10], 4294963200 }
  0x6c   :  { %1854 = dma.done.wait [#allocation13], 1024  }
  0x6d   :  { %1855 = vsyncadd [#allocation13], 4294966272  ;;  %v1868_v0 = vmov 0   ;;  %v1572_v1 = vld [vmem:[#allocation8 + $0x4] ss:$8 sps:$4 sm:$0xff]   ;;  %v2004_v31 = vld [vmem:[#allocation3] sm:$0xff]  }
  0x6e   :  { %387 = vmatprep.mubr.bf16.mxu1 %v1868_v0  ;;  %248 = vmatprep.mubr.bf16.mxu0 %v1868_v0  ;;  %v1574_v2 = vld [vmem:[#allocation8] ss:$8 sps:$4 sm:$0xff]   ;;  %v1575_v3 = vld [vmem:[#allocation8 + $0x14] ss:$8 sps:$4 sm:$0xff]   ;;  %v1577_v4 = vld [vmem:[#allocation6 + $0x4] ss:$8 sps:$4 sm:$0xff]  }
  0x6f   :  { %355 = vmatprep.subr.bf16.mxu1 %v1572_v1  ;;  %v1579_v5 = vld [vmem:[#allocation8 + $0x10] ss:$8 sps:$4 sm:$0xff]   ;;  %v1580_v6 = vld [vmem:[#allocation6] ss:$8 sps:$4 sm:$0xff]   ;;  %v1581_v7 = vld [vmem:[#allocation8 + $0x24] ss:$8 sps:$4 sm:$0xff]   ;;  %216 = vmatprep.subr.bf16.mxu0 %v1577_v4 }
  0x70   :  { %356 = vmatpush1.bf16.msra.mxu1 %v1574_v2  ;;  %v1583_v8 = vld [vmem:[#allocation6 + $0x14] ss:$8 sps:$4 sm:$0xff]   ;;  %217 = vmatpush1.bf16.msra.mxu0 %v1580_v6  ;;  %v1586_v9 = vld [vmem:[#allocation6 + $0x10] ss:$8 sps:$4 sm:$0xff]   ;;  %v1585_v10 = vld [vmem:[#allocation8 + $0x20] ss:$8 sps:$4 sm:$0xff]  }
  0x71   :  { %357 = vmatprep.subr.bf16.mxu1 %v1575_v3  ;;  %218 = vmatprep.subr.bf16.mxu0 %v1583_v8  ;;  %v1587_v11 = vld [vmem:[#allocation8 + $0x34] ss:$8 sps:$4 sm:$0xff]   ;;  %v1589_v12 = vld [vmem:[#allocation6 + $0x24] ss:$8 sps:$4 sm:$0xff]   ;;  %v1592_v13 = vld [vmem:[#allocation6 + $0x20] ss:$8 sps:$4 sm:$0xff]  }
  0x72   :  { %v1591_v14 = vld [vmem:[#allocation8 + $0x30] ss:$8 sps:$4 sm:$0xff]   ;;  %v1595_v15 = vld [vmem:[#allocation6 + $0x34] ss:$8 sps:$4 sm:$0xff]   ;;  %v1593_v16 = vld [vmem:[#allocation8 + $0x44] ss:$8 sps:$4 sm:$0xff]  }
  0x73   :  { %v1597_v17 = vld [vmem:[#allocation8 + $0x40] ss:$8 sps:$4 sm:$0xff]   ;;  %v1598_v18 = vld [vmem:[#allocation6 + $0x30] ss:$8 sps:$4 sm:$0xff]   ;;  %v1601_v19 = vld [vmem:[#allocation6 + $0x44] ss:$8 sps:$4 sm:$0xff]  }
  0x74   :  { %358 = vmatpush1.bf16.msra.mxu1 %v1579_v5  ;;  %219 = vmatpush1.bf16.msra.mxu0 %v1586_v9  ;;  %v1599_v20 = vld [vmem:[#allocation8 + $0x54] ss:$8 sps:$4 sm:$0xff]   ;;  %v1604_v21 = vld [vmem:[#allocation6 + $0x40] ss:$8 sps:$4 sm:$0xff]   ;;  %v1603_v22 = vld [vmem:[#allocation8 + $0x50] ss:$8 sps:$4 sm:$0xff]  }
  0x75   :  { %359 = vmatprep.subr.bf16.mxu1 %v1581_v7  ;;  %220 = vmatprep.subr.bf16.mxu0 %v1589_v12  ;;  %v1607_v23 = vld [vmem:[#allocation6 + $0x54] ss:$8 sps:$4 sm:$0xff]   ;;  %v1605_v24 = vld [vmem:[#allocation8 + $0x64] ss:$8 sps:$4 sm:$0xff]   ;;  %v1609_v25 = vld [vmem:[#allocation8 + $0x60] ss:$8 sps:$4 sm:$0xff]  }
  0x76   :  { %v1610_v26 = vld [vmem:[#allocation6 + $0x50] ss:$8 sps:$4 sm:$0xff]   ;;  %v1613_v27 = vld [vmem:[#allocation6 + $0x64] ss:$8 sps:$4 sm:$0xff]   ;;  %v1611_v28 = vld [vmem:[#allocation8 + $0x74] ss:$8 sps:$4 sm:$0xff]  }
  0x77   :  { %v1615_v29 = vld [vmem:[#allocation8 + $0x70] ss:$8 sps:$4 sm:$0xff]   ;;  %v1616_v30 = vld [vmem:[#allocation6 + $0x60] ss:$8 sps:$4 sm:$0xff]   ;;  %v1618_v32 = vld [vmem:[#allocation6 + $0x74] ss:$8 sps:$4 sm:$0xff]  }
  0x78   :  { %360 = vmatpush1.bf16.msra.mxu1 %v1585_v10  ;;  %221 = vmatpush1.bf16.msra.mxu0 %v1592_v13  ;;  %v1620_v33 = vld [vmem:[#allocation6 + $0x70] ss:$8 sps:$4 sm:$0xff]   ;;  %v1623_v34 = vld [vmem:[#allocation9 + $0x4] ss:$8 sps:$4 sm:$0xff]   ;;  %v1621_v35 = vld [vmem:[#allocation9] ss:$8 sps:$4 sm:$0xff]  }
  0x79   :  { %361 = vmatprep.subr.bf16.mxu1 %v1587_v11  ;;  %222 = vmatprep.subr.bf16.mxu0 %v1595_v15  ;;  %v1626_v36 = vld [vmem:[#allocation9 + $0x14] ss:$8 sps:$4 sm:$0xff]   ;;  %v1624_v37 = vld [vmem:[#allocation9 + $0x10] ss:$8 sps:$4 sm:$0xff]   ;;  %v1629_v38 = vld [vmem:[#allocation9 + $0x24] ss:$8 sps:$4 sm:$0xff]  }
  0x7a   :  { %v1627_v39 = vld [vmem:[#allocation9 + $0x20] ss:$8 sps:$4 sm:$0xff]   ;;  %v1632_v40 = vld [vmem:[#allocation9 + $0x34] ss:$8 sps:$4 sm:$0xff]   ;;  %v1630_v41 = vld [vmem:[#allocation9 + $0x30] ss:$8 sps:$4 sm:$0xff]  }
  0x7b   :  { %v1635_v42 = vld [vmem:[#allocation9 + $0x44] ss:$8 sps:$4 sm:$0xff]   ;;  %v1633_v43 = vld [vmem:[#allocation9 + $0x40] ss:$8 sps:$4 sm:$0xff]   ;;  %v1638_v44 = vld [vmem:[#allocation9 + $0x54] ss:$8 sps:$4 sm:$0xff]  }
  0x7c   :  { %362 = vmatpush1.bf16.msra.mxu1 %v1591_v14  ;;  %223 = vmatpush1.bf16.msra.mxu0 %v1598_v18  ;;  %v1636_v45 = vld [vmem:[#allocation9 + $0x50] ss:$8 sps:$4 sm:$0xff]   ;;  %v1641_v46 = vld [vmem:[#allocation9 + $0x64] ss:$8 sps:$4 sm:$0xff]   ;;  %v1639_v47 = vld [vmem:[#allocation9 + $0x60] ss:$8 sps:$4 sm:$0xff]  }
  0x7d   :  { %363 = vmatprep.subr.bf16.mxu1 %v1593_v16  ;;  %224 = vmatprep.subr.bf16.mxu0 %v1601_v19  ;;  %v1644_v48 = vld [vmem:[#allocation9 + $0x74] ss:$8 sps:$4 sm:$0xff]   ;;  %v1642_v49 = vld [vmem:[#allocation9 + $0x70] ss:$8 sps:$4 sm:$0xff]   ;;  %v1869_v50 = vmov 0.0   ;;  %vm1870_vm0 = vmmov 0  }
  0x7e   :  { %vm596_vm1 = vcmask 1043456   ;;  %vm580_vm2 = vcmask 64512   ;;  %s1871_s14 = smov [#allocation14]  }
  0x7f   :  { %s1346_s16 = sshll.u32 %s1871_s14, 4  ;;  %s1347_s16 = int_to_ptr.vmem [resolvable:$true] %s1346_s16 }
  0x80   :  { %364 = vmatpush1.bf16.msra.mxu1 %v1597_v17  ;;  %225 = vmatpush1.bf16.msra.mxu0 %v1604_v21  ;;  %s1826_s17 = scalar_lea.vmem %s1347_s16, 256  ;;  %p1831_p7 = scmp.lt.s32.totalorder %s1347_s16, %s1347_s16 }
  0x81   :  { %365 = vmatprep.subr.bf16.mxu1 %v1599_v20  ;;  %226 = vmatprep.subr.bf16.mxu0 %v1607_v23  ;;  %p1827_p6 = scmp.ne.s32.totalorder %s1347_s16, %s1826_s17  ;;  %p1832_p8 = scmp.lt.s32.totalorder %s1826_s17, %s1826_s17 }
  0x83   :  { %p1833_p9 = por %p1832_p8, %p1831_p7 }
  0x84   :  { %366 = vmatpush1.bf16.msra.mxu1 %v1603_v22  ;;  %227 = vmatpush1.bf16.msra.mxu0 %v1610_v26 }
  0x85   :  { %367 = vmatprep.subr.bf16.mxu1 %v1605_v24  ;;  %228 = vmatprep.subr.bf16.mxu0 %v1613_v27  ;;  %p1834_p10 = pnand %p1833_p9, %p1827_p6 }
  0x88   :  { %368 = vmatpush1.bf16.msra.mxu1 %v1609_v25  ;;  %229 = vmatpush1.bf16.msra.mxu0 %v1616_v30 }
  0x89   :  { %369 = vmatprep.subr.bf16.mxu1 %v1611_v28  ;;  %230 = vmatprep.subr.bf16.mxu0 %v1618_v32 }
  0x8c   :  { %370 = vmatpush1.bf16.msra.mxu1 %v1615_v29  ;;  %231 = vmatpush1.bf16.msra.mxu0 %v1620_v33 }
  0x8d   :  { %494 = vmatprep.subr.bf16.mxu0 %v1623_v34  ;;  %1490 = vmatprep.subr.bf16.mxu1 %v1869_v50 }
  0x8f   :  { %388 = vmatmul.mubr.bf16.vlgmr.msra.gmra.mrb[0].mxu1 %v2004_v31  ;;  %249 = vmatmul.mubr.bf16.vlgmr.msra.gmra.mrb[0].mxu0 %v2004_v31 }
  0x90   :  { %495 = vmatpush1.bf16.msra.mxu0 %v1621_v35  ;;  %526 = vmatprep.mubr.bf16.mxu0 %v1868_v0 }
  0x91   :  { %496 = vmatprep.subr.bf16.mxu0 %v1626_v36  ;;  %1492 = vmatprep.mubr.msk.bf16.mxu1 %vm1870_vm0, %v1869_v50 }
  0x94   :  { %497 = vmatpush1.bf16.msra.mxu0 %v1624_v37 }
  0x95   :  { %498 = vmatprep.subr.bf16.mxu0 %v1629_v38 }
  0x98   :  { %499 = vmatpush1.bf16.msra.mxu0 %v1627_v39 }
  0x99   :  { %500 = vmatprep.subr.bf16.mxu0 %v1632_v40 }
  0x9c   :  { %501 = vmatpush1.bf16.msra.mxu0 %v1630_v41 }
  0x9d   :  { %502 = vmatprep.subr.bf16.mxu0 %v1635_v42 }
  0xa0   :  { %503 = vmatpush1.bf16.msra.mxu0 %v1633_v43 }
  0xa1   :  { %504 = vmatprep.subr.bf16.mxu0 %v1638_v44 }
  0xa4   :  { %505 = vmatpush1.bf16.msra.mxu0 %v1636_v45 }
  0xa5   :  { %506 = vmatprep.subr.bf16.mxu0 %v1641_v46 }
  0xa8   :  { %507 = vmatpush1.bf16.msra.mxu0 %v1639_v47 }
  0xa9   :  { %508 = vmatprep.subr.bf16.mxu0 %v1644_v48 }
  0xac   :  { %509 = vmatpush1.bf16.msra.mxu0 %v1642_v49 }
  0xad   :  { %1514 = vmatprep.subr.bf16.mxu0 %v1869_v50 }
  0xaf   :  { %527 = vmatmul.mubr.bf16.vlgmr.msra.gmra.mrb[4].mxu0 %v2004_v31 }
  0xb0   :  { %1516 = vmatprep.mubr.msk.bf16.mxu0 %vm1870_vm0, %v1869_v50 }
 0x162   :  { %v389_v51 = vpop.f32.mrb[0].mxu1  ;;  %v250_v57 = vpop.f32.mrb[0].mxu0 }
 0x163   :  { %v538_v52 = vpack.c.bf16 %v389_v51, %v389_v51  ;;  %v391_v53 = vpop.f32.mrb[1].mxu1  ;;  %v252_v58 = vpop.f32.mrb[1].mxu0  ;;  %v537_v60 = vpack.c.bf16 %v250_v57, %v250_v57 }
 0x164   :  { %v744_v54 = vpack.c.bf16 %v391_v53, %v391_v53  ;;  %v2016_v55 = vpop.f32.mrb[2].mxu1  ;;  %v2019_v59 = vpop.f32.mrb[2].mxu0  ;;  %v743_v62 = vpack.c.bf16 %v252_v58, %v252_v58 }
 0x165   :  { %v395_v56 = vpop.f32.mrb[3].mxu1  ;;  %1491 = vmatpush3.bf16.xpose.msra.mxu1 %v538_v52  ;;  %v256_v61 = vpop.f32.mrb[3].mxu0  ;;  %v641_v37 = vpack.c.bf16 %v2016_v55, %v2016_v55  ;;  %v640_v38 = vpack.c.bf16 %v2019_v59, %v2019_v59 }
 0x166   :  { %1515 = vmatpush3.bf16.xpose.msra.mxu0 %v744_v54  ;;  %1496 = vmatprep.subr.bf16.mxu1 %v1869_v50  ;;  %v845_v63 = vpack.c.bf16 %v395_v56, %v395_v56  ;;  %v844_v0 = vpack.c.bf16 %v256_v61, %v256_v61 }
 0x167   :  { %1526 = vmatprep.subr.bf16.mxu0 %v1869_v50 }
 0x16c   :  { %1493 = vmatmul.mubr.bf16.vlgmr.msra.gmra.mrb[4].mxu1 %v537_v60 }
 0x16d   :  { %1517 = vmatmul.mubr.bf16.vlgmr.msra.gmra.mrb[8].mxu0 %v743_v62  ;;  %1498 = vmatprep.mubr.msk.bf16.mxu1 %vm1870_vm0, %v1869_v50 }
 0x16e   :  { %1527 = vmatpush3.bf16.xpose.msra.mxu0 %v845_v63  ;;  %1528 = vmatprep.mubr.msk.bf16.mxu0 %vm1870_vm0, %v1869_v50 }
 0x175   :  { %1529 = vmatmul.mubr.bf16.vlgmr.msra.gmra.mrb[12].mxu0 %v844_v0 }
 0x182   :  { %v528_v1 = vpop.f32.mrb[4].mxu0 }
 0x183   :  { %v539_v2 = vpack.c.bf16 %v528_v1, %v528_v1  ;;  %v530_v3 = vpop.f32.mrb[5].mxu0  ;;  %v1645_v1 = vld [vmem:[#allocation11 + $0x40] sm:$0xff]  }
 0x184   :  { %v745_v4 = vpack.c.bf16 %v530_v3, %v530_v3  ;;  %v532_v5 = vpop.f32.mrb[6].mxu0  ;;  %v1647_v3 = vld [vmem:[#allocation11 + $0x48] sm:$0xff]   ;;  %1459 = vmatprep.subr.bf16.mxu0 %v1645_v1 }
 0x185   :  { %v598_v6 = vsel %vm596_vm1, %v539_v2, 0  ;;  %v642_v7 = vpack.c.bf16 %v532_v5, %v532_v5  ;;  %v534_v8 = vpop.f32.mrb[7].mxu0  ;;  %v1646_v2 = vld [vmem:[#allocation11] sm:$0xff]   ;;  %v1649_v5 = vld [vmem:[#allocation11 + $0x50] sm:$0xff]  }
 0x186   :  { %v2026_v9 = vsel %vm596_vm1, %v745_v4, 0  ;;  %v846_v10 = vpack.c.bf16 %v534_v8, %v534_v8  ;;  %1497 = vmatpush3.bf16.msra.mxu1 %v598_v6  ;;  %1460 = vmatpush3.bf16.msra.mxu0 %v1646_v2  ;;  %v1648_v4 = vld [vmem:[#allocation11 + $0x8] sm:$0xff]   ;;  %v1650_v6 = vld [vmem:[#allocation11 + $0x10] sm:$0xff]  }
 0x187   :  { %v699_v11 = vsel %vm596_vm1, %v642_v7, 0  ;;  %1502 = vmatprep.subr.bf16.mxu1 %v1869_v50  ;;  %1461 = vmatprep.subr.bf16.mxu0 %v1647_v3 }
 0x188   :  { %v2029_v12 = vsel %vm596_vm1, %v846_v10, 0 }
 0x18a   :  { %1462 = vmatpush3.bf16.msra.mxu0 %v1648_v4 }
 0x18b   :  { %1463 = vmatprep.subr.bf16.mxu0 %v1649_v5 }
 0x18e   :  { %1464 = vmatpush3.bf16.msra.mxu0 %v1650_v6 }
 0x23f   :  { %v574_v13 = vpop.f32.mrb[4].mxu1 }
 0x240   :  { %v1494_v14 = vpop.f32.mrb[5].mxu1  ;;  %v780_v15 = vpop.f32.mrb[8].mxu0  ;;  %v581_v16 = vsel %vm580_vm2, %v574_v13, -inf }
 0x241   :  { %582 = vmax.xlane.f32.xlu0 %v581_v16  ;;  %v577_v17 = vpop.f32.mrb[6].mxu1  ;;  %v1518_v18 = vpop.f32.mrb[9].mxu0  ;;  %v786_v48 = vsel %vm580_vm2, %v780_v15, -inf }
 0x242   :  { %v1495_v19 = vpop.f32.mrb[7].mxu1  ;;  %v783_v20 = vpop.f32.mrb[10].mxu0 }
 0x243   :  { %v1519_v21 = vpop.f32.mrb[11].mxu0 }
 0x244   :  { %v1652_v21 = vld [vmem:[#allocation11 + $0x18] sm:$0xff]  }
 0x248   :  { %v881_v22 = vpop.f32.mrb[12].mxu0 }
 0x249   :  { %v1530_v23 = vpop.f32.mrb[13].mxu0  ;;  %v887_v32 = vsel %vm580_vm2, %v881_v22, -inf }
 0x24a   :  { %v884_v24 = vpop.f32.mrb[14].mxu0  ;;  %v1654_v23 = vld [vmem:[#allocation11 + $0x20] sm:$0xff]  }
 0x24b   :  { %v1531_v25 = vpop.f32.mrb[15].mxu0  ;;  %v1656_v24 = vld [vmem:[#allocation11 + $0x28] sm:$0xff]  }
 0x24c   :  { %v1657_v25 = vld [vmem:[#allocation11 + $0x70] sm:$0xff]  }
 0x2ce   :  { %v583_v26 = vpop.xlane.xlu0 %582 }
 0x2cf   :  { %v584_v27 = vsub.f32 %v574_v13, %v583_v26  ;;  %v1658_v26 = vld [vmem:[#allocation11 + $0x30] sm:$0xff]  }
 0x2d1   :  { %v585_v28 = vmul.f32 1.442695, %v584_v27  ;;  %v1659_v27 = vld [vmem:[#allocation11 + $0x78] sm:$0xff]  }
 0x2d3   :  { %1670 = vpow2.f32 %v585_v28  ;;  %v1660_v28 = vld [vmem:[#allocation11 + $0x38] sm:$0xff]  }
 0x2dd   :  { %v1671_v29 = vpop.eup %1670 }
 0x2de   :  { %v587_v30 = vsel %vm580_vm2, %v1671_v29, 0.0 }
 0x2df   :  { %588 = vadd.xlane.f32.xlu0 %v587_v30 }
 0x2e3   :  { %888 = vmax.xlane.f32.xlu0 %v887_v32 }
 0x36c   :  { %v589_v33 = vpop.xlane.xlu0 %588 }
 0x36d   :  { %1672 = vrcp.f32 %v589_v33 }
 0x370   :  { %v889_v49 = vpop.xlane.xlu0 %888 }
 0x371   :  { %v890_v51 = vsub.f32 %v881_v22, %v889_v49  ;;  %v1653_v22 = vld [vmem:[#allocation11 + $0x60] sm:$0xff]  }
 0x373   :  { %v891_v54 = vmul.f32 1.442695, %v890_v51 }
 0x377   :  { %v1673_v34 = vpop.eup %1672 }
 0x378   :  { %v591_v35 = vmul.f32 %v1673_v34, %v1671_v29 }
 0x37a   :  { %v592_v36 = vpack.c.bf16 %v591_v35, %v591_v35 }
 0x37c   :  { %1499 = vmatmul.mubr.msk.bf16.vlgmr.msra.gmra.mrb[8].mxu1 %vm580_vm2, %v592_v36 }
 0x37d   :  { %1503 = vmatpush3.bf16.xpose.msra.mxu1 %v641_v37  ;;  %1504 = vmatprep.mubr.msk.bf16.mxu1 %vm1870_vm0, %v1869_v50 }
 0x37e   :  { %1508 = vmatprep.subr.bf16.mxu1 %v1869_v50 }
 0x384   :  { %1505 = vmatmul.mubr.bf16.vlgmr.msra.gmra.mrb[12].mxu1 %v640_v38 }
 0x385   :  { %1509 = vmatpush3.bf16.msra.mxu1 %v699_v11  ;;  %1510 = vmatprep.mubr.msk.bf16.mxu1 %vm1870_vm0, %v1869_v50 }
 0x386   :  { %1520 = vmatprep.subr.bf16.mxu1 %v1869_v50 }
 0x44f   :  { %v2045_v39 = vpop.f32.mrb[8].mxu1 }
 0x450   :  { %v1500_v40 = vpop.f32.mrb[9].mxu1 }
 0x451   :  { %v637_v41 = vpop.f32.mrb[10].mxu1 }
 0x452   :  { %v1501_v42 = vpop.f32.mrb[11].mxu1 }
 0x457   :  { %v677_v43 = vpop.f32.mrb[12].mxu1 }
 0x458   :  { %v1506_v44 = vpop.f32.mrb[13].mxu1  ;;  %v683_v45 = vsel %vm580_vm2, %v677_v43, -inf }
 0x459   :  { %684 = vmax.xlane.f32.xlu1 %v683_v45  ;;  %v680_v46 = vpop.f32.mrb[14].mxu1  ;;  %v1118_v45 = vlaneseq }
 0x45a   :  { %v1507_v47 = vpop.f32.mrb[15].mxu1 }
 0x45b   :  { %v1119_v46 = vshrl.u32 %v1118_v45, 7  ;;  %v1146_v49 = vand.u32 127, %v1118_v45 }
 0x45d   :  { %787 = vmax.xlane.f32.xlu1 %v786_v48  ;;  %v1120_v47 = vadd.s32 8, %v1119_v46  ;;  %v1125_v48 = vand.u32 7, %v1119_v46 }
 0x45f   :  { %vm1147_vm3 = vcmp.gt.s32.totalorder %v1146_v49, %v1125_v48 }
 0x4e6   :  { %v685_v52 = vpop.xlane.xlu1 %684 }
 0x4e7   :  { %v686_v53 = vsub.f32 %v677_v43, %v685_v52 }
 0x4e9   :  { %v687_v55 = vmul.f32 1.442695, %v686_v53  ;;  %v112_v53 = vunpack.c.l.bf16 %v2004_v31 }
 0x4ea   :  { %v788_v56 = vpop.xlane.xlu1 %787 }
 0x4eb   :  { %1674 = vpow2.f32 %v687_v55  ;;  %v789_v57 = vsub.f32 %v780_v15, %v788_v56 }
 0x4ec   :  { %1676 = vpow2.f32 %v891_v54 }
 0x4ed   :  { %v790_v58 = vmul.f32 1.442695, %v789_v57  ;;  %v113_v57 = vunpack.c.h.bf16 %v2004_v31 }
 0x4ef   :  { %1678 = vpow2.f32 %v790_v58 }
 0x4f5   :  { %v1675_v59 = vpop.eup %1674 }
 0x4f6   :  { %v689_v60 = vsel %vm580_vm2, %v1675_v59, 0.0  ;;  %v1677_v61 = vpop.eup %1676 }
 0x4f7   :  { %690 = vadd.xlane.f32.xlu1 %v689_v60  ;;  %v893_v0 = vsel %vm580_vm2, %v1677_v61, 0.0 }
 0x4f9   :  { %v1679_v62 = vpop.eup %1678 }
 0x4fa   :  { %v792_v63 = vsel %vm580_vm2, %v1679_v62, 0.0 }
 0x4fb   :  { %793 = vadd.xlane.f32.xlu0 %v792_v63  ;;  %894 = vadd.xlane.f32.xlu1 %v893_v0  ;;  %v1661_v63 = vld [vmem:[#allocation12] sm:$0xff]   ;;  %v1662_v0 = vld [vmem:[#allocation12 + $0x8] sm:$0xff]  }
 0x584   :  { %v691_v7 = vpop.xlane.xlu1 %690 }
 0x585   :  { %1680 = vrcp.f32 %v691_v7 }
 0x588   :  { %v794_v8 = vpop.xlane.xlu0 %793  ;;  %v895_v10 = vpop.xlane.xlu1 %894 }
 0x589   :  { %1682 = vrcp.f32 %v794_v8  ;;  %v1663_v8 = vld [vmem:[#allocation12 + $0x10] sm:$0xff]  }
 0x58a   :  { %1684 = vrcp.f32 %v895_v10  ;;  %v1664_v10 = vld [vmem:[#allocation12 + $0x18] sm:$0xff]  }
 0x58f   :  { %v1681_v11 = vpop.eup %1680 }
 0x590   :  { %v693_v13 = vmul.f32 %v1681_v11, %v1675_v59  ;;  %v1665_v11 = vld [vmem:[#allocation12 + $0x20] sm:$0xff]  }
 0x592   :  { %v694_v14 = vpack.c.bf16 %v693_v13, %v693_v13  ;;  %v1666_v13 = vld [vmem:[#allocation12 + $0x28] sm:$0xff]  }
 0x593   :  { %v1683_v15 = vpop.eup %1682 }
 0x594   :  { %1511 = vmatmul.mubr.msk.bf16.vlgmr.msra.gmra.mrb[16].mxu1 %vm580_vm2, %v694_v14  ;;  %v796_v16 = vmul.f32 %v1683_v15, %v1679_v62  ;;  %v1685_v18 = vpop.eup %1684  ;;  %v1667_v14 = vld [vmem:[#allocation12 + $0x30] sm:$0xff]   ;;  %v1668_v15 = vld [vmem:[#allocation12 + $0x38] sm:$0xff]  }
 0x595   :  { %1521 = vmatpush3.bf16.msra.mxu1 %v2026_v9  ;;  %1522 = vmatprep.mubr.msk.bf16.mxu1 %vm1870_vm0, %v1869_v50  ;;  %v897_v19 = vmul.f32 %v1685_v18, %v1677_v61  ;;  %v1651_v9 = vld [vmem:[#allocation11 + $0x58] sm:$0xff]  }
 0x596   :  { %1532 = vmatprep.subr.bf16.mxu1 %v1869_v50  ;;  %v797_v17 = vpack.c.bf16 %v796_v16, %v796_v16  ;;  %1465 = vmatprep.subr.bf16.mxu0 %v1651_v9 }
 0x597   :  { %v898_v20 = vpack.c.bf16 %v897_v19, %v897_v19  ;;  %1466 = vmatpush3.bf16.msra.mxu0 %v1652_v21 }
 0x598   :  { %1467 = vmatprep.subr.bf16.mxu0 %v1653_v22  ;;  %v1430_v22 = vld [vmem:[%s2111_s6] ss:$0 sm:$0xff] }
 0x59b   :  { %1468 = vmatpush3.bf16.msra.mxu0 %v1654_v23 }
 0x59c   :  { %1523 = vmatmul.mubr.msk.bf16.vlgmr.msra.gmra.mrb[20].mxu1 %vm580_vm2, %v797_v17 }
 0x59d   :  { %1533 = vmatpush3.bf16.msra.mxu1 %v2029_v12  ;;  %1534 = vmatprep.mubr.msk.bf16.mxu1 %vm1870_vm0, %v1869_v50  ;;  %v1655_v12 = vld [vmem:[#allocation11 + $0x68] sm:$0xff]  }
 0x59e   :  { %1538 = vmatprep.subr.bf16.mxu1 %v1869_v50  ;;  %1469 = vmatprep.subr.bf16.mxu0 %v1655_v12 }
 0x59f   :  { %1470 = vmatpush3.bf16.msra.mxu0 %v1656_v24 }
 0x5a0   :  { %1471 = vmatprep.subr.bf16.mxu0 %v1657_v25 }
 0x5a3   :  { %1472 = vmatpush3.bf16.msra.mxu0 %v1658_v26 }
 0x5a4   :  { %1535 = vmatmul.mubr.msk.bf16.vlgmr.msra.gmra.mrb[24].mxu1 %vm580_vm2, %v898_v20  ;;  %1473 = vmatprep.subr.bf16.mxu0 %v1659_v27 }
 0x5a5   :  { %1554 = vmatprep.mubr.msk.bf16.mxu1 %vm1870_vm0, %v1869_v50  ;;  %1539 = vmatpush3.bf16.msra.mxu1 %v1661_v63 }
 0x5a6   :  { %1540 = vmatprep.subr.bf16.mxu1 %v1869_v50 }
 0x5a7   :  { %1474 = vmatpush3.bf16.msra.mxu0 %v1660_v28 }
 0x5a9   :  { %1541 = vmatpush3.bf16.msra.mxu1 %v1662_v0 }
 0x5aa   :  { %1542 = vmatprep.subr.bf16.mxu1 %v1869_v50 }
 0x5ad   :  { %1543 = vmatpush3.bf16.msra.mxu1 %v1663_v8 }
 0x5ae   :  { %1544 = vmatprep.subr.bf16.mxu1 %v1869_v50 }
 0x5b1   :  { %1545 = vmatpush3.bf16.msra.mxu1 %v1664_v10 }
 0x5b2   :  { %1546 = vmatprep.subr.bf16.mxu1 %v1869_v50 }
 0x5b5   :  { %1547 = vmatpush3.bf16.msra.mxu1 %v1665_v11 }
 0x5b6   :  { %1548 = vmatprep.subr.bf16.mxu1 %v1869_v50 }
 0x5b9   :  { %1549 = vmatpush3.bf16.msra.mxu1 %v1666_v13 }
 0x5ba   :  { %1550 = vmatprep.subr.bf16.mxu1 %v1869_v50 }
 0x5bd   :  { %1551 = vmatpush3.bf16.msra.mxu1 %v1667_v14 }
 0x5be   :  { %1552 = vmatprep.subr.bf16.mxu1 %v1869_v50  ;;  %v1431_v50 = vld [vmem:[%s2111_s6 + $0x1] ss:$0 sm:$0xff] }
 0x5c1   :  { %1553 = vmatpush3.bf16.msra.mxu1 %v1668_v15 }
 0x667   :  { %v735_v29 = vpop.f32.mrb[16].mxu1 }
 0x668   :  { %v741_v30 = vpack.c.bf16 %v735_v29, %v2045_v39  ;;  %v1512_v32 = vpop.f32.mrb[17].mxu1  ;;  %v1132_v39 = vand.u32 7, %v1120_v47 }
 0x669   :  { %v738_v33 = vpop.f32.mrb[18].mxu1 }
 0x66a   :  { %v1513_v34 = vpop.f32.mrb[19].mxu1  ;;  %vm1148_vm4 = vcmp.gt.s32.totalorder %v1146_v49, %v1132_v39 }
 0x66f   :  { %v838_v35 = vpop.f32.mrb[20].mxu1 }
 0x670   :  { %v1524_v36 = vpop.f32.mrb[21].mxu1 }
 0x671   :  { %v841_v37 = vpop.f32.mrb[22].mxu1 }
 0x672   :  { %v1525_v38 = vpop.f32.mrb[23].mxu1 }
 0x677   :  { %v939_v40 = vpop.f32.mrb[24].mxu1 }
 0x678   :  { %v945_v41 = vpack.c.bf16 %v939_v40, %v838_v35  ;;  %v1536_v42 = vpop.f32.mrb[25].mxu1 }
 0x679   :  { %v942_v43 = vpop.f32.mrb[26].mxu1 }
 0x67a   :  { %v1537_v44 = vpop.f32.mrb[27].mxu1  ;;  %1109 = vmatprep.mubr.bf16.mxu0 %v945_v41 }
 0x67b   :  { %1110 = vmatmul.mubr.bf16.vlgmr.msra.gmra.mrb[16].mxu0 %v741_v30  ;;  %v1432_v30 = vld [vmem:[%s2111_s6 + $0x2] ss:$0 sm:$0xff] }
 0x74e   :  { %v1475_v51 = vpop.f32.mrb[16].mxu0 }
 0x74f   :  { %v1476_v52 = vpop.f32.mrb[17].mxu0 }
 0x750   :  { %v1477_v54 = vadd.f32 %v1476_v52, %v1475_v51  ;;  %v1478_v55 = vpop.f32.mrb[18].mxu0 }
 0x751   :  { %v1479_v56 = vpop.f32.mrb[19].mxu0 }
 0x752   :  { %v1480_v58 = vadd.f32 %v1479_v56, %v1478_v55  ;;  %v1149_v59 = vsel %vm1147_vm3, -1e+09, %v1477_v54  ;;  %v1441_v56 = vld [vmem:[%s2111_s6 + $0x3] ss:$0 sm:$0xff] }
 0x753   :  { %v1156_v60 = vadd.f32 %v1149_v59, %v112_v53  ;;  %v1442_v59 = vld [vmem:[%s2111_s6 + $0x4] ss:$0 sm:$0xff] }
 0x754   :  { %v1150_v61 = vsel %vm1148_vm4, -1e+09, %v1480_v58 }
 0x755   :  { %1158 = vadd.xlane.f32.xlu0 %v1156_v60  ;;  %v1157_v62 = vadd.f32 %v1150_v61, %v113_v57 }
 0x757   :  { %1160 = vadd.xlane.f32.xlu1 %v1157_v62 }
 0x7e2   :  { %v1159_v1 = vpop.xlane.xlu0 %1158 }
 0x7e3   :  { %v1163_v2 = vmul.f32 0.0078125, %v1159_v1 }
 0x7e4   :  { %v1161_v3 = vpop.xlane.xlu1 %1160 }
 0x7e5   :  { %v1165_v31 = vsub.f32 %v1156_v60, %v1163_v2  ;;  %v1164_v4 = vmul.f32 0.0078125, %v1161_v3 }
 0x7e7   :  { %v1166_v5 = vsub.f32 %v1157_v62, %v1164_v4  ;;  %v1167_v6 = vmul.f32 %v1165_v31, %v1165_v31 }
 0x7e9   :  { %1169 = vadd.xlane.f32.xlu0 %v1167_v6  ;;  %v1168_v7 = vmul.f32 %v1166_v5, %v1166_v5 }
 0x7eb   :  { %1171 = vadd.xlane.f32.xlu1 %v1168_v7 }
 0x876   :  { %v1170_v16 = vpop.xlane.xlu0 %1169 }
 0x877   :  { %v1173_v17 = vmul.f32 0.0078125, %v1170_v16 }
 0x878   :  { %v1172_v18 = vpop.xlane.xlu1 %1171 }
 0x879   :  { %v1175_v19 = vadd.f32 1e-05, %v1173_v17  ;;  %v1174_v20 = vmul.f32 0.0078125, %v1172_v18 }
 0x87b   :  { %1686 = vrsqrt.f32 %v1175_v19  ;;  %v1176_v9 = vadd.f32 1e-05, %v1174_v20 }
 0x87d   :  { %1688 = vrsqrt.f32 %v1176_v9 }
 0x885   :  { %v1687_v21 = vpop.eup %1686 }
 0x886   :  { %v1179_v23 = vmul.f32 %v1687_v21, %v1165_v31 }
 0x887   :  { %v1689_v12 = vpop.eup %1688 }
 0x888   :  { %v1180_v24 = vmul.f32 %v1689_v12, %v1166_v5  ;;  %v1185_v25 = vmul.f32 %v1430_v22, %v1179_v23 }
 0x88a   :  { %v1186_v26 = vmul.f32 %v1430_v22, %v1180_v24  ;;  %v1191_v27 = vadd.f32 %v1431_v50, %v1185_v25 }
 0x88c   :  { %v1192_v28 = vadd.f32 %v1431_v50, %v1186_v26 }
 0x88e   :  { %v1193_v29 = vpack.c.bf16 %v1192_v28, %v1191_v27 }
 0x890   :  { %1555 = vmatmul.mubr.bf16.vlgmr.msra.gmra.mrb[28].mxu1 %v1193_v29 }
 0x963   :  { %v1296_v32 = vpop.f32.mrb[28].mxu1 }
 0x964   :  { %v1297_v33 = vadd.f32 %v1432_v30, %v1296_v32  ;;  %v1556_v34 = vpop.f32.mrb[29].mxu1 }
 0x965   :  { %v1299_v35 = vpop.f32.mrb[30].mxu1 }
 0x966   :  { %v1300_v36 = vadd.f32 %v1432_v30, %v1299_v35  ;;  %v1557_v37 = vpop.f32.mrb[31].mxu1  ;;  %v1303_v38 = vadd.f32 %v1297_v33, %v1191_v27 }
 0x968   :  { %1305 = vadd.xlane.f32.xlu0 %v1303_v38  ;;  %v1304_v40 = vadd.f32 %v1300_v36, %v1192_v28 }
 0x96a   :  { %1307 = vadd.xlane.f32.xlu1 %v1304_v40 }
 0x9f5   :  { %v1306_v41 = vpop.xlane.xlu0 %1305 }
 0x9f6   :  { %v1309_v42 = vmul.f32 0.0078125, %v1306_v41 }
 0x9f7   :  { %v1308_v43 = vpop.xlane.xlu1 %1307 }
 0x9f8   :  { %v1311_v44 = vsub.f32 %v1303_v38, %v1309_v42  ;;  %v1310_v45 = vmul.f32 0.0078125, %v1308_v43 }
 0x9fa   :  { %v1312_v46 = vsub.f32 %v1304_v40, %v1310_v45  ;;  %v1313_v47 = vmul.f32 %v1311_v44, %v1311_v44 }
 0x9fc   :  { %1315 = vadd.xlane.f32.xlu0 %v1313_v47  ;;  %v1314_v48 = vmul.f32 %v1312_v46, %v1312_v46 }
 0x9fe   :  { %1317 = vadd.xlane.f32.xlu1 %v1314_v48 }
 0xa89   :  { %v1316_v49 = vpop.xlane.xlu0 %1315 }
 0xa8a   :  { %v1319_v39 = vmul.f32 0.0078125, %v1316_v49 }
 0xa8b   :  { %v1318_v51 = vpop.xlane.xlu1 %1317 }
 0xa8c   :  { %v1321_v52 = vadd.f32 1e-05, %v1319_v39  ;;  %v1320_v53 = vmul.f32 0.0078125, %v1318_v51 }
 0xa8e   :  { %1690 = vrsqrt.f32 %v1321_v52  ;;  %v1322_v54 = vadd.f32 1e-05, %v1320_v53 }
 0xa90   :  { %1692 = vrsqrt.f32 %v1322_v54 }
 0xa98   :  { %v1691_v55 = vpop.eup %1690 }
 0xa99   :  { %v1325_v57 = vmul.f32 %v1691_v55, %v1311_v44 }
 0xa9a   :  { %v1693_v58 = vpop.eup %1692 }
 0xa9b   :  { %v1326_v60 = vmul.f32 %v1693_v58, %v1312_v46  ;;  %v1331_v61 = vmul.f32 %v1441_v56, %v1325_v57 }
 0xa9d   :  { %v1332_v62 = vmul.f32 %v1441_v56, %v1326_v60  ;;  %v1337_v63 = vadd.f32 %v1442_v59, %v1331_v61 }
 0xa9f   :  { %v1338_v0 = vadd.f32 %v1442_v59, %v1332_v62  ;;  %1339 = vst [vmem:[#allocation14] sm:$0xff] %v1337_v63 }
 0xaa1   :  { %1340 = vst [vmem:[#allocation14 + $0x8] sm:$0xff] %v1338_v0 }
 0xaa2   :  { %1837 = shalt.err (!%p1834_p10)
}
 0xaa3   :  { %s1838_s6 = scalar_lea.hbm %s2112_s7, 256 }
 0xaa4   :  { %p1839_p11 = scmp.ne.s32.totalorder %s2112_s7, %s1838_s6  ;;  %p1842_p12 = scmp.lt.u32.totalorder %s1838_s6, %s2112_s7 }
 0xaa6   :  { %p1844_p13 = pnand %p1842_p12, %p1839_p11 }
 0xaa8   :  { %1847 = shalt.err (!%p1844_p13)
}
 0xaa9   :  { %1352 = dma.vmem_to_hbm [thread:$0]  %s1347_s16, 256, %s2112_s7, [#allocation5], %s1859_s11, %s1859_s11, %s1860_s12  }
 0xaaa   :  { %1856 = dma.done.wait [#allocation5], 256  }
 0xaab   :  { %1857 = vsyncadd [#allocation5], 4294967040 }
 0xaac   :  { %1356 = vsyncpa [#allocation4], 1 }
 0xaad   :  { %1357 = vsyncpa [#allocation7], 1 }
 0xaae   :  { %1358 = vsyncpa [#allocation10], 1 }
 0xaaf   :  { %1359 = vsyncpa [#allocation13], 1 }
 0xab0   :  { %1360 = vsyncpa [#allocation5], 1 }

// kernel: tpu_custom_call.1
= control target key start
LH: loop header
LB: loop body
LE: loop exit
PB: predicated region body
PF: predicated region fallthrough
CT: control target
= control target key end

     0   :  { %12 = vsyncpa [#allocation4], 0  ;;  %s2105_s0 = inlined_call_operand.hbm [shape: bf16[16,128], index: 0, kind: input, shape index: {}]   ;;  %s2106_s1 = inlined_call_operand.hbm [shape: bf16[128,256], index: 1, kind: input, shape index: {}]   ;;  %s2107_s2 = inlined_call_operand.hbm [shape: bf16[128,256], index: 2, kind: input, shape index: {}]   ;;  %s2108_s3 = inlined_call_operand.hbm [shape: bf16[128,256], index: 3, kind: input, shape index: {}]   ;;  %s2109_s4 = inlined_call_operand.hbm [shape: bf16[256,128], index: 4, kind: input, shape index: {}]   ;;  %s2110_s5 = inlined_call_operand.hbm [shape: bf16[128,128], index: 5, kind: input, shape index: {}]   ;;  %s2111_s6 = inlined_call_operand.vmem [shape: f32[8,128], index: 6, kind: input, shape index: {}]   ;;  %s2112_s7 = inlined_call_operand.hbm [shape: f32[16,128], index: 7, kind: output, shape index: {}]  }
   0x1   :  { %13 = vsyncpa [#allocation7], 0 }
   0x2   :  { %14 = vsyncpa [#allocation10], 0 }
   0x3   :  { %15 = vsyncpa [#allocation13], 0 }
   0x4   :  { %16 = vsyncpa [#allocation5], 0  ;;  %s1858_s24 = smov [#allocation6]   ;;  %s1694_s28 = scalar_lea.hbm %s2106_s1, 2048 }
   0x5   :  { %s34_s25 = sshll.u32 %s1858_s24, 4  ;;  %p1695_p0 = scmp.ne.s32.totalorder %s2106_s1, %s1694_s28  ;;  %s35_s25 = int_to_ptr.vmem [resolvable:$true] %s34_s25 }
   0x6   :  { %p1698_p1 = scmp.lt.u32.totalorder %s1694_s28, %s2106_s1 }
   0x8   :  { %p1700_p2 = pnand %p1698_p1, %p1695_p0 }
   0xa   :  { %1703 = shalt.err (!%p1700_p2)
}
   0xb   :  { %s1704_s10 = scalar_lea.vmem %s35_s25, 2048  ;;  %p1709_p4 = scmp.lt.s32.totalorder %s35_s25, %s35_s25 }
   0xc   :  { %p1705_p3 = scmp.ne.s32.totalorder %s35_s25, %s1704_s10  ;;  %p1710_p5 = scmp.lt.s32.totalorder %s1704_s10, %s1704_s10 }
   0xe   :  { %p1711_p6 = por %p1710_p5, %p1709_p4 }
  0x10   :  { %p1712_p7 = pnand %p1711_p6, %p1705_p3 }
  0x12   :  { %1715 = shalt.err (!%p1712_p7)
}
  0x13   :  { %s1859_s11 = smov 128   ;;  %s1860_s12 = smov 8  }
  0x14   :  { %40 = dma.hbm_to_vmem [thread:$0]  %s2106_s1, 2048, %s35_s25, [#allocation7], %s1859_s11, %s1859_s11, %s1860_s12  }
  0x15   :  { %s1861_s15 = smov [#allocation9]   ;;  %s1862_s17 = smov [#allocation3]  }
  0x16   :  { %s58_s16 = sshll.u32 %s1861_s15, 4  ;;  %s22_s18 = sshll.u32 %s1862_s17, 4  ;;  %s59_s16 = int_to_ptr.vmem [resolvable:$true] %s58_s16  ;;  %s23_s18 = int_to_ptr.vmem [resolvable:$true] %s22_s18 }
  0x17   :  { %s1716_s21 = scalar_lea.hbm %s2108_s3, 2048 }
  0x18   :  { %p1717_p8 = scmp.ne.s32.totalorder %s2108_s3, %s1716_s21  ;;  %p1720_p9 = scmp.lt.u32.totalorder %s1716_s21, %s2108_s3 }
  0x1a   :  { %p1722_p10 = pnand %p1720_p9, %p1717_p8 }
  0x1c   :  { %1725 = shalt.err (!%p1722_p10)
}
  0x1d   :  { %s1726_s1 = scalar_lea.vmem %s59_s16, 2048  ;;  %p1731_p12 = scmp.lt.s32.totalorder %s59_s16, %s59_s16 }
  0x1e   :  { %p1727_p11 = scmp.ne.s32.totalorder %s59_s16, %s1726_s1  ;;  %p1732_p13 = scmp.lt.s32.totalorder %s1726_s1, %s1726_s1 }
  0x20   :  { %p1733_p0 = por %p1732_p13, %p1731_p12 }
  0x22   :  { %p1734_p1 = pnand %p1733_p0, %p1727_p11 }
  0x24   :  { %1737 = shalt.err (!%p1734_p1)
}
  0x25   :  { %64 = dma.hbm_to_vmem [thread:$0]  %s2108_s3, 2048, %s59_s16, [#allocation10], %s1859_s11, %s1859_s11, %s1860_s12  }
  0x26   :  { %s1738_s30 = scalar_lea.hbm %s2105_s0, 128 }
  0x27   :  { %p1739_p2 = scmp.ne.s32.totalorder %s2105_s0, %s1738_s30  ;;  %p1742_p3 = scmp.lt.u32.totalorder %s1738_s30, %s2105_s0 }
  0x29   :  { %p1744_p4 = pnand %p1742_p3, %p1739_p2 }
  0x2b   :  { %1747 = shalt.err (!%p1744_p4)
}
  0x2c   :  { %s1748_s14 = scalar_lea.vmem %s23_s18, 128  ;;  %p1753_p6 = scmp.lt.s32.totalorder %s23_s18, %s23_s18 }
  0x2d   :  { %p1749_p5 = scmp.ne.s32.totalorder %s23_s18, %s1748_s14  ;;  %p1754_p7 = scmp.lt.s32.totalorder %s1748_s14, %s1748_s14 }
  0x2f   :  { %p1755_p8 = por %p1754_p7, %p1753_p6 }
  0x31   :  { %p1756_p9 = pnand %p1755_p8, %p1749_p5 }
  0x33   :  { %1759 = shalt.err (!%p1756_p9)
}
  0x34   :  { %s1863_s3 = smov 64   ;;  %s1864_s15 = smov 4  }
  0x35   :  { %28 = dma.hbm_to_vmem [thread:$0]  %s2105_s0, 128, %s23_s18, [#allocation4], %s1863_s3, %s1863_s3, %s1864_s15  }
  0x36   :  { %s1865_s19 = smov [#allocation8]   ;;  %s1866_s21 = smov [#allocation11]  }
  0x37   :  { %s46_s20 = sshll.u32 %s1865_s19, 4  ;;  %s70_s22 = sshll.u32 %s1866_s21, 4  ;;  %s47_s20 = int_to_ptr.vmem [resolvable:$true] %s46_s20  ;;  %s71_s22 = int_to_ptr.vmem [resolvable:$true] %s70_s22 }
  0x38   :  { %s1760_s26 = scalar_lea.hbm %s2107_s2, 2048 }
  0x39   :  { %p1761_p10 = scmp.ne.s32.totalorder %s2107_s2, %s1760_s26  ;;  %p1764_p11 = scmp.lt.u32.totalorder %s1760_s26, %s2107_s2 }
  0x3b   :  { %p1766_p12 = pnand %p1764_p11, %p1761_p10 }
  0x3d   :  { %1769 = shalt.err (!%p1766_p12)
}
  0x3e   :  { %s1770_s0 = scalar_lea.vmem %s47_s20, 2048  ;;  %p1775_p0 = scmp.lt.s32.totalorder %s47_s20, %s47_s20 }
  0x3f   :  { %p1771_p13 = scmp.ne.s32.totalorder %s47_s20, %s1770_s0  ;;  %p1776_p1 = scmp.lt.s32.totalorder %s1770_s0, %s1770_s0 }
  0x41   :  { %p1777_p2 = por %p1776_p1, %p1775_p0 }
  0x43   :  { %p1778_p3 = pnand %p1777_p2, %p1771_p13 }
  0x45   :  { %1781 = shalt.err (!%p1778_p3)
}
  0x46   :  { %52 = dma.hbm_to_vmem [thread:$0]  %s2107_s2, 2048, %s47_s20, [#allocation7], %s1859_s11, %s1859_s11, %s1860_s12  }
  0x47   :  { %s1782_s9 = scalar_lea.hbm %s2109_s4, 2048 }
  0x48   :  { %p1783_p4 = scmp.ne.s32.totalorder %s2109_s4, %s1782_s9  ;;  %p1786_p5 = scmp.lt.u32.totalorder %s1782_s9, %s2109_s4 }
  0x4a   :  { %p1788_p6 = pnand %p1786_p5, %p1783_p4 }
  0x4c   :  { %1791 = shalt.err (!%p1788_p6)
}
  0x4d   :  { %s1792_s17 = scalar_lea.vmem %s71_s22, 2048  ;;  %p1797_p8 = scmp.lt.s32.totalorder %s71_s22, %s71_s22 }
  0x4e   :  { %p1793_p7 = scmp.ne.s32.totalorder %s71_s22, %s1792_s17  ;;  %p1798_p9 = scmp.lt.s32.totalorder %s1792_s17, %s1792_s17 }
  0x50   :  { %p1799_p10 = por %p1798_p9, %p1797_p8 }
  0x52   :  { %p1800_p11 = pnand %p1799_p10, %p1793_p7 }
  0x54   :  { %1803 = shalt.err (!%p1800_p11)
}
  0x55   :  { %76 = dma.hbm_to_vmem [thread:$0]  %s2109_s4, 2048, %s71_s22, [#allocation10], %s1863_s3, %s1863_s3, %s1864_s15  }
  0x56   :  { %s1867_s20 = smov [#allocation12]   ;;  %s1804_s26 = scalar_lea.hbm %s2110_s5, 1024 }
  0x57   :  { %s82_s21 = sshll.u32 %s1867_s20, 4  ;;  %p1805_p12 = scmp.ne.s32.totalorder %s2110_s5, %s1804_s26  ;;  %s83_s21 = int_to_ptr.vmem [resolvable:$true] %s82_s21 }
  0x58   :  { %p1808_p13 = scmp.lt.u32.totalorder %s1804_s26, %s2110_s5 }
  0x5a   :  { %p1810_p0 = pnand %p1808_p13, %p1805_p12 }
  0x5c   :  { %1813 = shalt.err (!%p1810_p0)
}
  0x5d   :  { %s1814_s0 = scalar_lea.vmem %s83_s21, 1024  ;;  %p1819_p2 = scmp.lt.s32.totalorder %s83_s21, %s83_s21 }
  0x5e   :  { %p1815_p1 = scmp.ne.s32.totalorder %s83_s21, %s1814_s0  ;;  %p1820_p3 = scmp.lt.s32.totalorder %s1814_s0, %s1814_s0 }
  0x60   :  { %p1821_p4 = por %p1820_p3, %p1819_p2 }
  0x62   :  { %p1822_p5 = pnand %p1821_p4, %p1815_p1 }
  0x64   :  { %1825 = shalt.err (!%p1822_p5)
}
  0x65   :  { %88 = dma.hbm_to_vmem [thread:$0]  %s2110_s5, 1024, %s83_s21, [#allocation13], %s1863_s3, %s1863_s3, %s1864_s15  }
  0x66   :  { %1848 = dma.done.wait [#allocation4], 128  }
  0x67   :  { %1849 = vsyncadd [#allocation4], 4294967168 }
  0x68   :  { %1850 = dma.done.wait [#allocation7], 4096  }
  0x69   :  { %1851 = vsyncadd [#allocation7], 4294963200 }
  0x6a   :  { %1852 = dma.done.wait [#allocation10], 4096  }
  0x6b   :  { %1853 = vsyncadd [#allocation10], 4294963200 }
  0x6c   :  { %1854 = dma.done.wait [#allocation13], 1024  }
  0x6d   :  { %1855 = vsyncadd [#allocation13], 4294966272  ;;  %v1868_v0 = vmov 0   ;;  %v1572_v1 = vld [vmem:[#allocation8 + $0x4] ss:$8 sps:$4 sm:$0xff]   ;;  %v2004_v31 = vld [vmem:[#allocation3] sm:$0xff]  }
  0x6e   :  { %387 = vmatprep.mubr.bf16.mxu1 %v1868_v0  ;;  %248 = vmatprep.mubr.bf16.mxu0 %v1868_v0  ;;  %v1574_v2 = vld [vmem:[#allocation8] ss:$8 sps:$4 sm:$0xff]   ;;  %v1575_v3 = vld [vmem:[#allocation8 + $0x14] ss:$8 sps:$4 sm:$0xff]   ;;  %v1577_v4 = vld [vmem:[#allocation6 + $0x4] ss:$8 sps:$4 sm:$0xff]  }
  0x6f   :  { %355 = vmatprep.subr.bf16.mxu1 %v1572_v1  ;;  %v1579_v5 = vld [vmem:[#allocation8 + $0x10] ss:$8 sps:$4 sm:$0xff]   ;;  %v1580_v6 = vld [vmem:[#allocation6] ss:$8 sps:$4 sm:$0xff]   ;;  %v1581_v7 = vld [vmem:[#allocation8 + $0x24] ss:$8 sps:$4 sm:$0xff]   ;;  %216 = vmatprep.subr.bf16.mxu0 %v1577_v4 }
  0x70   :  { %356 = vmatpush1.bf16.msra.mxu1 %v1574_v2  ;;  %v1583_v8 = vld [vmem:[#allocation6 + $0x14] ss:$8 sps:$4 sm:$0xff]   ;;  %217 = vmatpush1.bf16.msra.mxu0 %v1580_v6  ;;  %v1586_v9 = vld [vmem:[#allocation6 + $0x10] ss:$8 sps:$4 sm:$0xff]   ;;  %v1585_v10 = vld [vmem:[#allocation8 + $0x20] ss:$8 sps:$4 sm:$0xff]  }
  0x71   :  { %357 = vmatprep.subr.bf16.mxu1 %v1575_v3  ;;  %218 = vmatprep.subr.bf16.mxu0 %v1583_v8  ;;  %v1587_v11 = vld [vmem:[#allocation8 + $0x34] ss:$8 sps:$4 sm:$0xff]   ;;  %v1589_v12 = vld [vmem:[#allocation6 + $0x24] ss:$8 sps:$4 sm:$0xff]   ;;  %v1592_v13 = vld [vmem:[#allocation6 + $0x20] ss:$8 sps:$4 sm:$0xff]  }
  0x72   :  { %v1591_v14 = vld [vmem:[#allocation8 + $0x30] ss:$8 sps:$4 sm:$0xff]   ;;  %v1595_v15 = vld [vmem:[#allocation6 + $0x34] ss:$8 sps:$4 sm:$0xff]   ;;  %v1593_v16 = vld [vmem:[#allocation8 + $0x44] ss:$8 sps:$4 sm:$0xff]  }
  0x73   :  { %v1597_v17 = vld [vmem:[#allocation8 + $0x40] ss:$8 sps:$4 sm:$0xff]   ;;  %v1598_v18 = vld [vmem:[#allocation6 + $0x30] ss:$8 sps:$4 sm:$0xff]   ;;  %v1601_v19 = vld [vmem:[#allocation6 + $0x44] ss:$8 sps:$4 sm:$0xff]  }
  0x74   :  { %358 = vmatpush1.bf16.msra.mxu1 %v1579_v5  ;;  %219 = vmatpush1.bf16.msra.mxu0 %v1586_v9  ;;  %v1599_v20 = vld [vmem:[#allocation8 + $0x54] ss:$8 sps:$4 sm:$0xff]   ;;  %v1604_v21 = vld [vmem:[#allocation6 + $0x40] ss:$8 sps:$4 sm:$0xff]   ;;  %v1603_v22 = vld [vmem:[#allocation8 + $0x50] ss:$8 sps:$4 sm:$0xff]  }
  0x75   :  { %359 = vmatprep.subr.bf16.mxu1 %v1581_v7  ;;  %220 = vmatprep.subr.bf16.mxu0 %v1589_v12  ;;  %v1607_v23 = vld [vmem:[#allocation6 + $0x54] ss:$8 sps:$4 sm:$0xff]   ;;  %v1605_v24 = vld [vmem:[#allocation8 + $0x64] ss:$8 sps:$4 sm:$0xff]   ;;  %v1609_v25 = vld [vmem:[#allocation8 + $0x60] ss:$8 sps:$4 sm:$0xff]  }
  0x76   :  { %v1610_v26 = vld [vmem:[#allocation6 + $0x50] ss:$8 sps:$4 sm:$0xff]   ;;  %v1613_v27 = vld [vmem:[#allocation6 + $0x64] ss:$8 sps:$4 sm:$0xff]   ;;  %v1611_v28 = vld [vmem:[#allocation8 + $0x74] ss:$8 sps:$4 sm:$0xff]  }
  0x77   :  { %v1615_v29 = vld [vmem:[#allocation8 + $0x70] ss:$8 sps:$4 sm:$0xff]   ;;  %v1616_v30 = vld [vmem:[#allocation6 + $0x60] ss:$8 sps:$4 sm:$0xff]   ;;  %v1618_v32 = vld [vmem:[#allocation6 + $0x74] ss:$8 sps:$4 sm:$0xff]  }
  0x78   :  { %360 = vmatpush1.bf16.msra.mxu1 %v1585_v10  ;;  %221 = vmatpush1.bf16.msra.mxu0 %v1592_v13  ;;  %v1620_v33 = vld [vmem:[#allocation6 + $0x70] ss:$8 sps:$4 sm:$0xff]   ;;  %v1623_v34 = vld [vmem:[#allocation9 + $0x4] ss:$8 sps:$4 sm:$0xff]   ;;  %v1621_v35 = vld [vmem:[#allocation9] ss:$8 sps:$4 sm:$0xff]  }
  0x79   :  { %361 = vmatprep.subr.bf16.mxu1 %v1587_v11  ;;  %222 = vmatprep.subr.bf16.mxu0 %v1595_v15  ;;  %v1626_v36 = vld [vmem:[#allocation9 + $0x14] ss:$8 sps:$4 sm:$0xff]   ;;  %v1624_v37 = vld [vmem:[#allocation9 + $0x10] ss:$8 sps:$4 sm:$0xff]   ;;  %v1629_v38 = vld [vmem:[#allocation9 + $0x24] ss:$8 sps:$4 sm:$0xff]  }
  0x7a   :  { %v1627_v39 = vld [vmem:[#allocation9 + $0x20] ss:$8 sps:$4 sm:$0xff]   ;;  %v1632_v40 = vld [vmem:[#allocation9 + $0x34] ss:$8 sps:$4 sm:$0xff]   ;;  %v1630_v41 = vld [vmem:[#allocation9 + $0x30] ss:$8 sps:$4 sm:$0xff]  }
  0x7b   :  { %v1635_v42 = vld [vmem:[#allocation9 + $0x44] ss:$8 sps:$4 sm:$0xff]   ;;  %v1633_v43 = vld [vmem:[#allocation9 + $0x40] ss:$8 sps:$4 sm:$0xff]   ;;  %v1638_v44 = vld [vmem:[#allocation9 + $0x54] ss:$8 sps:$4 sm:$0xff]  }
  0x7c   :  { %362 = vmatpush1.bf16.msra.mxu1 %v1591_v14  ;;  %223 = vmatpush1.bf16.msra.mxu0 %v1598_v18  ;;  %v1636_v45 = vld [vmem:[#allocation9 + $0x50] ss:$8 sps:$4 sm:$0xff]   ;;  %v1641_v46 = vld [vmem:[#allocation9 + $0x64] ss:$8 sps:$4 sm:$0xff]   ;;  %v1639_v47 = vld [vmem:[#allocation9 + $0x60] ss:$8 sps:$4 sm:$0xff]  }
  0x7d   :  { %363 = vmatprep.subr.bf16.mxu1 %v1593_v16  ;;  %224 = vmatprep.subr.bf16.mxu0 %v1601_v19  ;;  %v1644_v48 = vld [vmem:[#allocation9 + $0x74] ss:$8 sps:$4 sm:$0xff]   ;;  %v1642_v49 = vld [vmem:[#allocation9 + $0x70] ss:$8 sps:$4 sm:$0xff]   ;;  %v1869_v50 = vmov 0.0   ;;  %vm1870_vm0 = vmmov 0  }
  0x7e   :  { %vm596_vm1 = vcmask 1043456   ;;  %vm580_vm2 = vcmask 64512   ;;  %s1871_s14 = smov [#allocation14]  }
  0x7f   :  { %s1346_s16 = sshll.u32 %s1871_s14, 4  ;;  %s1347_s16 = int_to_ptr.vmem [resolvable:$true] %s1346_s16 }
  0x80   :  { %364 = vmatpush1.bf16.msra.mxu1 %v1597_v17  ;;  %225 = vmatpush1.bf16.msra.mxu0 %v1604_v21  ;;  %s1826_s17 = scalar_lea.vmem %s1347_s16, 256  ;;  %p1831_p7 = scmp.lt.s32.totalorder %s1347_s16, %s1347_s16 }
  0x81   :  { %365 = vmatprep.subr.bf16.mxu1 %v1599_v20  ;;  %226 = vmatprep.subr.bf16.mxu0 %v1607_v23  ;;  %p1827_p6 = scmp.ne.s32.totalorder %s1347_s16, %s1826_s17  ;;  %p1832_p8 = scmp.lt.s32.totalorder %s1826_s17, %s1826_s17 }
  0x83   :  { %p1833_p9 = por %p1832_p8, %p1831_p7 }
  0x84   :  { %366 = vmatpush1.bf16.msra.mxu1 %v1603_v22  ;;  %227 = vmatpush1.bf16.msra.mxu0 %v1610_v26 }
  0x85   :  { %367 = vmatprep.subr.bf16.mxu1 %v1605_v24  ;;  %228 = vmatprep.subr.bf16.mxu0 %v1613_v27  ;;  %p1834_p10 = pnand %p1833_p9, %p1827_p6 }
  0x88   :  { %368 = vmatpush1.bf16.msra.mxu1 %v1609_v25  ;;  %229 = vmatpush1.bf16.msra.mxu0 %v1616_v30 }
  0x89   :  { %369 = vmatprep.subr.bf16.mxu1 %v1611_v28  ;;  %230 = vmatprep.subr.bf16.mxu0 %v1618_v32 }
  0x8c   :  { %370 = vmatpush1.bf16.msra.mxu1 %v1615_v29  ;;  %231 = vmatpush1.bf16.msra.mxu0 %v1620_v33 }
  0x8d   :  { %494 = vmatprep.subr.bf16.mxu0 %v1623_v34  ;;  %1490 = vmatprep.subr.bf16.mxu1 %v1869_v50 }
  0x8f   :  { %388 = vmatmul.mubr.bf16.vlgmr.msra.gmra.mrb[0].mxu1 %v2004_v31  ;;  %249 = vmatmul.mubr.bf16.vlgmr.msra.gmra.mrb[0].mxu0 %v2004_v31 }
  0x90   :  { %495 = vmatpush1.bf16.msra.mxu0 %v1621_v35  ;;  %526 = vmatprep.mubr.bf16.mxu0 %v1868_v0 }
  0x91   :  { %496 = vmatprep.subr.bf16.mxu0 %v1626_v36  ;;  %1492 = vmatprep.mubr.msk.bf16.mxu1 %vm1870_vm0, %v1869_v50 }
  0x94   :  { %497 = vmatpush1.bf16.msra.mxu0 %v1624_v37 }
  0x95   :  { %498 = vmatprep.subr.bf16.mxu0 %v1629_v38 }
  0x98   :  { %499 = vmatpush1.bf16.msra.mxu0 %v1627_v39 }
  0x99   :  { %500 = vmatprep.subr.bf16.mxu0 %v1632_v40 }
  0x9c   :  { %501 = vmatpush1.bf16.msra.mxu0 %v1630_v41 }
  0x9d   :  { %502 = vmatprep.subr.bf16.mxu0 %v1635_v42 }
  0xa0   :  { %503 = vmatpush1.bf16.msra.mxu0 %v1633_v43 }
  0xa1   :  { %504 = vmatprep.subr.bf16.mxu0 %v1638_v44 }
  0xa4   :  { %505 = vmatpush1.bf16.msra.mxu0 %v1636_v45 }
  0xa5   :  { %506 = vmatprep.subr.bf16.mxu0 %v1641_v46 }
  0xa8   :  { %507 = vmatpush1.bf16.msra.mxu0 %v1639_v47 }
  0xa9   :  { %508 = vmatprep.subr.bf16.mxu0 %v1644_v48 }
  0xac   :  { %509 = vmatpush1.bf16.msra.mxu0 %v1642_v49 }
  0xad   :  { %1514 = vmatprep.subr.bf16.mxu0 %v1869_v50 }
  0xaf   :  { %527 = vmatmul.mubr.bf16.vlgmr.msra.gmra.mrb[4].mxu0 %v2004_v31 }
  0xb0   :  { %1516 = vmatprep.mubr.msk.bf16.mxu0 %vm1870_vm0, %v1869_v50 }
 0x162   :  { %v389_v51 = vpop.f32.mrb[0].mxu1  ;;  %v250_v57 = vpop.f32.mrb[0].mxu0 }
 0x163   :  { %v538_v52 = vpack.c.bf16 %v389_v51, %v389_v51  ;;  %v391_v53 = vpop.f32.mrb[1].mxu1  ;;  %v252_v58 = vpop.f32.mrb[1].mxu0  ;;  %v537_v60 = vpack.c.bf16 %v250_v57, %v250_v57 }
 0x164   :  { %v744_v54 = vpack.c.bf16 %v391_v53, %v391_v53  ;;  %v2016_v55 = vpop.f32.mrb[2].mxu1  ;;  %v2019_v59 = vpop.f32.mrb[2].mxu0  ;;  %v743_v62 = vpack.c.bf16 %v252_v58, %v252_v58 }
 0x165   :  { %v395_v56 = vpop.f32.mrb[3].mxu1  ;;  %1491 = vmatpush3.bf16.xpose.msra.mxu1 %v538_v52  ;;  %v256_v61 = vpop.f32.mrb[3].mxu0  ;;  %v641_v37 = vpack.c.bf16 %v2016_v55, %v2016_v55  ;;  %v640_v38 = vpack.c.bf16 %v2019_v59, %v2019_v59 }
 0x166   :  { %1515 = vmatpush3.bf16.xpose.msra.mxu0 %v744_v54  ;;  %1496 = vmatprep.subr.bf16.mxu1 %v1869_v50  ;;  %v845_v63 = vpack.c.bf16 %v395_v56, %v395_v56  ;;  %v844_v0 = vpack.c.bf16 %v256_v61, %v256_v61 }
 0x167   :  { %1526 = vmatprep.subr.bf16.mxu0 %v1869_v50 }
 0x16c   :  { %1493 = vmatmul.mubr.bf16.vlgmr.msra.gmra.mrb[4].mxu1 %v537_v60 }
 0x16d   :  { %1517 = vmatmul.mubr.bf16.vlgmr.msra.gmra.mrb[8].mxu0 %v743_v62  ;;  %1498 = vmatprep.mubr.msk.bf16.mxu1 %vm1870_vm0, %v1869_v50 }
 0x16e   :  { %1527 = vmatpush3.bf16.xpose.msra.mxu0 %v845_v63  ;;  %1528 = vmatprep.mubr.msk.bf16.mxu0 %vm1870_vm0, %v1869_v50 }
 0x175   :  { %1529 = vmatmul.mubr.bf16.vlgmr.msra.gmra.mrb[12].mxu0 %v844_v0 }
 0x182   :  { %v528_v1 = vpop.f32.mrb[4].mxu0 }
 0x183   :  { %v539_v2 = vpack.c.bf16 %v528_v1, %v528_v1  ;;  %v530_v3 = vpop.f32.mrb[5].mxu0  ;;  %v1645_v1 = vld [vmem:[#allocation11 + $0x40] sm:$0xff]  }
 0x184   :  { %v745_v4 = vpack.c.bf16 %v530_v3, %v530_v3  ;;  %v532_v5 = vpop.f32.mrb[6].mxu0  ;;  %v1647_v3 = vld [vmem:[#allocation11 + $0x48] sm:$0xff]   ;;  %1459 = vmatprep.subr.bf16.mxu0 %v1645_v1 }
 0x185   :  { %v598_v6 = vsel %vm596_vm1, %v539_v2, 0  ;;  %v642_v7 = vpack.c.bf16 %v532_v5, %v532_v5  ;;  %v534_v8 = vpop.f32.mrb[7].mxu0  ;;  %v1646_v2 = vld [vmem:[#allocation11] sm:$0xff]   ;;  %v1649_v5 = vld [vmem:[#allocation11 + $0x50] sm:$0xff]  }
 0x186   :  { %v2026_v9 = vsel %vm596_vm1, %v745_v4, 0  ;;  %v846_v10 = vpack.c.bf16 %v534_v8, %v534_v8  ;;  %1497 = vmatpush3.bf16.msra.mxu1 %v598_v6  ;;  %1460 = vmatpush3.bf16.msra.mxu0 %v1646_v2  ;;  %v1648_v4 = vld [vmem:[#allocation11 + $0x8] sm:$0xff]   ;;  %v1650_v6 = vld [vmem:[#allocation11 + $0x10] sm:$0xff]  }
 0x187   :  { %v699_v11 = vsel %vm596_vm1, %v642_v7, 0  ;;  %1502 = vmatprep.subr.bf16.mxu1 %v1869_v50  ;;  %1461 = vmatprep.subr.bf16.mxu0 %v1647_v3 }
 0x188   :  { %v2029_v12 = vsel %vm596_vm1, %v846_v10, 0 }
 0x18a   :  { %1462 = vmatpush3.bf16.msra.mxu0 %v1648_v4 }
 0x18b   :  { %1463 = vmatprep.subr.bf16.mxu0 %v1649_v5 }
 0x18e   :  { %1464 = vmatpush3.bf16.msra.mxu0 %v1650_v6 }
 0x23f   :  { %v574_v13 = vpop.f32.mrb[4].mxu1 }
 0x240   :  { %v1494_v14 = vpop.f32.mrb[5].mxu1  ;;  %v780_v15 = vpop.f32.mrb[8].mxu0  ;;  %v581_v16 = vsel %vm580_vm2, %v574_v13, -inf }
 0x241   :  { %582 = vmax.xlane.f32.xlu0 %v581_v16  ;;  %v577_v17 = vpop.f32.mrb[6].mxu1  ;;  %v1518_v18 = vpop.f32.mrb[9].mxu0  ;;  %v786_v48 = vsel %vm580_vm2, %v780_v15, -inf }
 0x242   :  { %v1495_v19 = vpop.f32.mrb[7].mxu1  ;;  %v783_v20 = vpop.f32.mrb[10].mxu0 }
 0x243   :  { %v1519_v21 = vpop.f32.mrb[11].mxu0 }
 0x244   :  { %v1652_v21 = vld [vmem:[#allocation11 + $0x18] sm:$0xff]  }
 0x248   :  { %v881_v22 = vpop.f32.mrb[12].mxu0 }
 0x249   :  { %v1530_v23 = vpop.f32.mrb[13].mxu0  ;;  %v887_v32 = vsel %vm580_vm2, %v881_v22, -inf }
 0x24a   :  { %v884_v24 = vpop.f32.mrb[14].mxu0  ;;  %v1654_v23 = vld [vmem:[#allocation11 + $0x20] sm:$0xff]  }
 0x24b   :  { %v1531_v25 = vpop.f32.mrb[15].mxu0  ;;  %v1656_v24 = vld [vmem:[#allocation11 + $0x28] sm:$0xff]  }
 0x24c   :  { %v1657_v25 = vld [vmem:[#allocation11 + $0x70] sm:$0xff]  }
 0x2ce   :  { %v583_v26 = vpop.xlane.xlu0 %582 }
 0x2cf   :  { %v584_v27 = vsub.f32 %v574_v13, %v583_v26  ;;  %v1658_v26 = vld [vmem:[#allocation11 + $0x30] sm:$0xff]  }
 0x2d1   :  { %v585_v28 = vmul.f32 1.442695, %v584_v27  ;;  %v1659_v27 = vld [vmem:[#allocation11 + $0x78] sm:$0xff]  }
 0x2d3   :  { %1670 = vpow2.f32 %v585_v28  ;;  %v1660_v28 = vld [vmem:[#allocation11 + $0x38] sm:$0xff]  }
 0x2dd   :  { %v1671_v29 = vpop.eup %1670 }
 0x2de   :  { %v587_v30 = vsel %vm580_vm2, %v1671_v29, 0.0 }
 0x2df   :  { %588 = vadd.xlane.f32.xlu0 %v587_v30 }
 0x2e3   :  { %888 = vmax.xlane.f32.xlu0 %v887_v32 }
 0x36c   :  { %v589_v33 = vpop.xlane.xlu0 %588 }
 0x36d   :  { %1672 = vrcp.f32 %v589_v33 }
 0x370   :  { %v889_v49 = vpop.xlane.xlu0 %888 }
 0x371   :  { %v890_v51 = vsub.f32 %v881_v22, %v889_v49  ;;  %v1653_v22 = vld [vmem:[#allocation11 + $0x60] sm:$0xff]  }
 0x373   :  { %v891_v54 = vmul.f32 1.442695, %v890_v51 }
 0x377   :  { %v1673_v34 = vpop.eup %1672 }
 0x378   :  { %v591_v35 = vmul.f32 %v1673_v34, %v1671_v29 }
 0x37a   :  { %v592_v36 = vpack.c.bf16 %v591_v35, %v591_v35 }
 0x37c   :  { %1499 = vmatmul.mubr.msk.bf16.vlgmr.msra.gmra.mrb[8].mxu1 %vm580_vm2, %v592_v36 }
 0x37d   :  { %1503 = vmatpush3.bf16.xpose.msra.mxu1 %v641_v37  ;;  %1504 = vmatprep.mubr.msk.bf16.mxu1 %vm1870_vm0, %v1869_v50 }
 0x37e   :  { %1508 = vmatprep.subr.bf16.mxu1 %v1869_v50 }
 0x384   :  { %1505 = vmatmul.mubr.bf16.vlgmr.msra.gmra.mrb[12].mxu1 %v640_v38 }
 0x385   :  { %1509 = vmatpush3.bf16.msra.mxu1 %v699_v11  ;;  %1510 = vmatprep.mubr.msk.bf16.mxu1 %vm1870_vm0, %v1869_v50 }
 0x386   :  { %1520 = vmatprep.subr.bf16.mxu1 %v1869_v50 }
 0x44f   :  { %v2045_v39 = vpop.f32.mrb[8].mxu1 }
 0x450   :  { %v1500_v40 = vpop.f32.mrb[9].mxu1 }
 0x451   :  { %v637_v41 = vpop.f32.mrb[10].mxu1 }
 0x452   :  { %v1501_v42 = vpop.f32.mrb[11].mxu1 }
 0x457   :  { %v677_v43 = vpop.f32.mrb[12].mxu1 }
 0x458   :  { %v1506_v44 = vpop.f32.mrb[13].mxu1  ;;  %v683_v45 = vsel %vm580_vm2, %v677_v43, -inf }
 0x459   :  { %684 = vmax.xlane.f32.xlu1 %v683_v45  ;;  %v680_v46 = vpop.f32.mrb[14].mxu1  ;;  %v1118_v45 = vlaneseq }
 0x45a   :  { %v1507_v47 = vpop.f32.mrb[15].mxu1 }
 0x45b   :  { %v1119_v46 = vshrl.u32 %v1118_v45, 7  ;;  %v1146_v49 = vand.u32 127, %v1118_v45 }
 0x45d   :  { %787 = vmax.xlane.f32.xlu1 %v786_v48  ;;  %v1120_v47 = vadd.s32 8, %v1119_v46  ;;  %v1125_v48 = vand.u32 7, %v1119_v46 }
 0x45f   :  { %vm1147_vm3 = vcmp.gt.s32.totalorder %v1146_v49, %v1125_v48 }
 0x4e6   :  { %v685_v52 = vpop.xlane.xlu1 %684 }
 0x4e7   :  { %v686_v53 = vsub.f32 %v677_v43, %v685_v52 }
 0x4e9   :  { %v687_v55 = vmul.f32 1.442695, %v686_v53  ;;  %v112_v53 = vunpack.c.l.bf16 %v2004_v31 }
 0x4ea   :  { %v788_v56 = vpop.xlane.xlu1 %787 }
 0x4eb   :  { %1674 = vpow2.f32 %v687_v55  ;;  %v789_v57 = vsub.f32 %v780_v15, %v788_v56 }
 0x4ec   :  { %1676 = vpow2.f32 %v891_v54 }
 0x4ed   :  { %v790_v58 = vmul.f32 1.442695, %v789_v57  ;;  %v113_v57 = vunpack.c.h.bf16 %v2004_v31 }
 0x4ef   :  { %1678 = vpow2.f32 %v790_v58 }
 0x4f5   :  { %v1675_v59 = vpop.eup %1674 }
 0x4f6   :  { %v689_v60 = vsel %vm580_vm2, %v1675_v59, 0.0  ;;  %v1677_v61 = vpop.eup %1676 }
 0x4f7   :  { %690 = vadd.xlane.f32.xlu1 %v689_v60  ;;  %v893_v0 = vsel %vm580_vm2, %v1677_v61, 0.0 }
 0x4f9   :  { %v1679_v62 = vpop.eup %1678 }
 0x4fa   :  { %v792_v63 = vsel %vm580_vm2, %v1679_v62, 0.0 }
 0x4fb   :  { %793 = vadd.xlane.f32.xlu0 %v792_v63  ;;  %894 = vadd.xlane.f32.xlu1 %v893_v0  ;;  %v1661_v63 = vld [vmem:[#allocation12] sm:$0xff]   ;;  %v1662_v0 = vld [vmem:[#allocation12 + $0x8] sm:$0xff]  }
 0x584   :  { %v691_v7 = vpop.xlane.xlu1 %690 }
 0x585   :  { %1680 = vrcp.f32 %v691_v7 }
 0x588   :  { %v794_v8 = vpop.xlane.xlu0 %793  ;;  %v895_v10 = vpop.xlane.xlu1 %894 }
 0x589   :  { %1682 = vrcp.f32 %v794_v8  ;;  %v1663_v8 = vld [vmem:[#allocation12 + $0x10] sm:$0xff]  }
 0x58a   :  { %1684 = vrcp.f32 %v895_v10  ;;  %v1664_v10 = vld [vmem:[#allocation12 + $0x18] sm:$0xff]  }
 0x58f   :  { %v1681_v11 = vpop.eup %1680 }
 0x590   :  { %v693_v13 = vmul.f32 %v1681_v11, %v1675_v59  ;;  %v1665_v11 = vld [vmem:[#allocation12 + $0x20] sm:$0xff]  }
 0x592   :  { %v694_v14 = vpack.c.bf16 %v693_v13, %v693_v13  ;;  %v1666_v13 = vld [vmem:[#allocation12 + $0x28] sm:$0xff]  }
 0x593   :  { %v1683_v15 = vpop.eup %1682 }
 0x594   :  { %1511 = vmatmul.mubr.msk.bf16.vlgmr.msra.gmra.mrb[16].mxu1 %vm580_vm2, %v694_v14  ;;  %v796_v16 = vmul.f32 %v1683_v15, %v1679_v62  ;;  %v1685_v18 = vpop.eup %1684  ;;  %v1667_v14 = vld [vmem:[#allocation12 + $0x30] sm:$0xff]   ;;  %v1668_v15 = vld [vmem:[#allocation12 + $0x38] sm:$0xff]  }
 0x595   :  { %1521 = vmatpush3.bf16.msra.mxu1 %v2026_v9  ;;  %1522 = vmatprep.mubr.msk.bf16.mxu1 %vm1870_vm0, %v1869_v50  ;;  %v897_v19 = vmul.f32 %v1685_v18, %v1677_v61  ;;  %v1651_v9 = vld [vmem:[#allocation11 + $0x58] sm:$0xff]  }
 0x596   :  { %1532 = vmatprep.subr.bf16.mxu1 %v1869_v50  ;;  %v797_v17 = vpack.c.bf16 %v796_v16, %v796_v16  ;;  %1465 = vmatprep.subr.bf16.mxu0 %v1651_v9 }
 0x597   :  { %v898_v20 = vpack.c.bf16 %v897_v19, %v897_v19  ;;  %1466 = vmatpush3.bf16.msra.mxu0 %v1652_v21 }
 0x598   :  { %1467 = vmatprep.subr.bf16.mxu0 %v1653_v22  ;;  %v1430_v22 = vld [vmem:[%s2111_s6] ss:$0 sm:$0xff] }
 0x59b   :  { %1468 = vmatpush3.bf16.msra.mxu0 %v1654_v23 }
 0x59c   :  { %1523 = vmatmul.mubr.msk.bf16.vlgmr.msra.gmra.mrb[20].mxu1 %vm580_vm2, %v797_v17 }
 0x59d   :  { %1533 = vmatpush3.bf16.msra.mxu1 %v2029_v12  ;;  %1534 = vmatprep.mubr.msk.bf16.mxu1 %vm1870_vm0, %v1869_v50  ;;  %v1655_v12 = vld [vmem:[#allocation11 + $0x68] sm:$0xff]  }
 0x59e   :  { %1538 = vmatprep.subr.bf16.mxu1 %v1869_v50  ;;  %1469 = vmatprep.subr.bf16.mxu0 %v1655_v12 }
 0x59f   :  { %1470 = vmatpush3.bf16.msra.mxu0 %v1656_v24 }
 0x5a0   :  { %1471 = vmatprep.subr.bf16.mxu0 %v1657_v25 }
 0x5a3   :  { %1472 = vmatpush3.bf16.msra.mxu0 %v1658_v26 }
 0x5a4   :  { %1535 = vmatmul.mubr.msk.bf16.vlgmr.msra.gmra.mrb[24].mxu1 %vm580_vm2, %v898_v20  ;;  %1473 = vmatprep.subr.bf16.mxu0 %v1659_v27 }
 0x5a5   :  { %1554 = vmatprep.mubr.msk.bf16.mxu1 %vm1870_vm0, %v1869_v50  ;;  %1539 = vmatpush3.bf16.msra.mxu1 %v1661_v63 }
 0x5a6   :  { %1540 = vmatprep.subr.bf16.mxu1 %v1869_v50 }
 0x5a7   :  { %1474 = vmatpush3.bf16.msra.mxu0 %v1660_v28 }
 0x5a9   :  { %1541 = vmatpush3.bf16.msra.mxu1 %v1662_v0 }
 0x5aa   :  { %1542 = vmatprep.subr.bf16.mxu1 %v1869_v50 }
 0x5ad   :  { %1543 = vmatpush3.bf16.msra.mxu1 %v1663_v8 }
 0x5ae   :  { %1544 = vmatprep.subr.bf16.mxu1 %v1869_v50 }
 0x5b1   :  { %1545 = vmatpush3.bf16.msra.mxu1 %v1664_v10 }
 0x5b2   :  { %1546 = vmatprep.subr.bf16.mxu1 %v1869_v50 }
 0x5b5   :  { %1547 = vmatpush3.bf16.msra.mxu1 %v1665_v11 }
 0x5b6   :  { %1548 = vmatprep.subr.bf16.mxu1 %v1869_v50 }
 0x5b9   :  { %1549 = vmatpush3.bf16.msra.mxu1 %v1666_v13 }
 0x5ba   :  { %1550 = vmatprep.subr.bf16.mxu1 %v1869_v50 }
 0x5bd   :  { %1551 = vmatpush3.bf16.msra.mxu1 %v1667_v14 }
 0x5be   :  { %1552 = vmatprep.subr.bf16.mxu1 %v1869_v50  ;;  %v1431_v50 = vld [vmem:[%s2111_s6 + $0x1] ss:$0 sm:$0xff] }
 0x5c1   :  { %1553 = vmatpush3.bf16.msra.mxu1 %v1668_v15 }
 0x667   :  { %v735_v29 = vpop.f32.mrb[16].mxu1 }
 0x668   :  { %v741_v30 = vpack.c.bf16 %v735_v29, %v2045_v39  ;;  %v1512_v32 = vpop.f32.mrb[17].mxu1  ;;  %v1132_v39 = vand.u32 7, %v1120_v47 }
 0x669   :  { %v738_v33 = vpop.f32.mrb[18].mxu1 }
 0x66a   :  { %v1513_v34 = vpop.f32.mrb[19].mxu1  ;;  %vm1148_vm4 = vcmp.gt.s32.totalorder %v1146_v49, %v1132_v39 }
 0x66f   :  { %v838_v35 = vpop.f32.mrb[20].mxu1 }
 0x670   :  { %v1524_v36 = vpop.f32.mrb[21].mxu1 }
 0x671   :  { %v841_v37 = vpop.f32.mrb[22].mxu1 }
 0x672   :  { %v1525_v38 = vpop.f32.mrb[23].mxu1 }
 0x677   :  { %v939_v40 = vpop.f32.mrb[24].mxu1 }
 0x678   :  { %v945_v41 = vpack.c.bf16 %v939_v40, %v838_v35  ;;  %v1536_v42 = vpop.f32.mrb[25].mxu1 }
 0x679   :  { %v942_v43 = vpop.f32.mrb[26].mxu1 }
 0x67a   :  { %v1537_v44 = vpop.f32.mrb[27].mxu1  ;;  %1109 = vmatprep.mubr.bf16.mxu0 %v945_v41 }
 0x67b   :  { %1110 = vmatmul.mubr.bf16.vlgmr.msra.gmra.mrb[16].mxu0 %v741_v30  ;;  %v1432_v30 = vld [vmem:[%s2111_s6 + $0x2] ss:$0 sm:$0xff] }
 0x74e   :  { %v1475_v51 = vpop.f32.mrb[16].mxu0 }
 0x74f   :  { %v1476_v52 = vpop.f32.mrb[17].mxu0 }
 0x750   :  { %v1477_v54 = vadd.f32 %v1476_v52, %v1475_v51  ;;  %v1478_v55 = vpop.f32.mrb[18].mxu0 }
 0x751   :  { %v1479_v56 = vpop.f32.mrb[19].mxu0 }
 0x752   :  { %v1480_v58 = vadd.f32 %v1479_v56, %v1478_v55  ;;  %v1149_v59 = vsel %vm1147_vm3, -1e+09, %v1477_v54  ;;  %v1441_v56 = vld [vmem:[%s2111_s6 + $0x3] ss:$0 sm:$0xff] }
 0x753   :  { %v1156_v60 = vadd.f32 %v1149_v59, %v112_v53  ;;  %v1442_v59 = vld [vmem:[%s2111_s6 + $0x4] ss:$0 sm:$0xff] }
 0x754   :  { %v1150_v61 = vsel %vm1148_vm4, -1e+09, %v1480_v58 }
 0x755   :  { %1158 = vadd.xlane.f32.xlu0 %v1156_v60  ;;  %v1157_v62 = vadd.f32 %v1150_v61, %v113_v57 }
 0x757   :  { %1160 = vadd.xlane.f32.xlu1 %v1157_v62 }
 0x7e2   :  { %v1159_v1 = vpop.xlane.xlu0 %1158 }
 0x7e3   :  { %v1163_v2 = vmul.f32 0.0078125, %v1159_v1 }
 0x7e4   :  { %v1161_v3 = vpop.xlane.xlu1 %1160 }
 0x7e5   :  { %v1165_v31 = vsub.f32 %v1156_v60, %v1163_v2  ;;  %v1164_v4 = vmul.f32 0.0078125, %v1161_v3 }
 0x7e7   :  { %v1166_v5 = vsub.f32 %v1157_v62, %v1164_v4  ;;  %v1167_v6 = vmul.f32 %v1165_v31, %v1165_v31 }
 0x7e9   :  { %1169 = vadd.xlane.f32.xlu0 %v1167_v6  ;;  %v1168_v7 = vmul.f32 %v1166_v5, %v1166_v5 }
 0x7eb   :  { %1171 = vadd.xlane.f32.xlu1 %v1168_v7 }
 0x876   :  { %v1170_v16 = vpop.xlane.xlu0 %1169 }
 0x877   :  { %v1173_v17 = vmul.f32 0.0078125, %v1170_v16 }
 0x878   :  { %v1172_v18 = vpop.xlane.xlu1 %1171 }
 0x879   :  { %v1175_v19 = vadd.f32 1e-05, %v1173_v17  ;;  %v1174_v20 = vmul.f32 0.0078125, %v1172_v18 }
 0x87b   :  { %1686 = vrsqrt.f32 %v1175_v19  ;;  %v1176_v9 = vadd.f32 1e-05, %v1174_v20 }
 0x87d   :  { %1688 = vrsqrt.f32 %v1176_v9 }
 0x885   :  { %v1687_v21 = vpop.eup %1686 }
 0x886   :  { %v1179_v23 = vmul.f32 %v1687_v21, %v1165_v31 }
 0x887   :  { %v1689_v12 = vpop.eup %1688 }
 0x888   :  { %v1180_v24 = vmul.f32 %v1689_v12, %v1166_v5  ;;  %v1185_v25 = vmul.f32 %v1430_v22, %v1179_v23 }
 0x88a   :  { %v1186_v26 = vmul.f32 %v1430_v22, %v1180_v24  ;;  %v1191_v27 = vadd.f32 %v1431_v50, %v1185_v25 }
 0x88c   :  { %v1192_v28 = vadd.f32 %v1431_v50, %v1186_v26 }
 0x88e   :  { %v1193_v29 = vpack.c.bf16 %v1192_v28, %v1191_v27 }
 0x890   :  { %1555 = vmatmul.mubr.bf16.vlgmr.msra.gmra.mrb[28].mxu1 %v1193_v29 }
 0x963   :  { %v1296_v32 = vpop.f32.mrb[28].mxu1 }
 0x964   :  { %v1297_v33 = vadd.f32 %v1432_v30, %v1296_v32  ;;  %v1556_v34 = vpop.f32.mrb[29].mxu1 }
 0x965   :  { %v1299_v35 = vpop.f32.mrb[30].mxu1 }
 0x966   :  { %v1300_v36 = vadd.f32 %v1432_v30, %v1299_v35  ;;  %v1557_v37 = vpop.f32.mrb[31].mxu1  ;;  %v1303_v38 = vadd.f32 %v1297_v33, %v1191_v27 }
 0x968   :  { %1305 = vadd.xlane.f32.xlu0 %v1303_v38  ;;  %v1304_v40 = vadd.f32 %v1300_v36, %v1192_v28 }
 0x96a   :  { %1307 = vadd.xlane.f32.xlu1 %v1304_v40 }
 0x9f5   :  { %v1306_v41 = vpop.xlane.xlu0 %1305 }
 0x9f6   :  { %v1309_v42 = vmul.f32 0.0078125, %v1306_v41 }
 0x9f7   :  { %v1308_v43 = vpop.xlane.xlu1 %1307 }
 0x9f8   :  { %v1311_v44 = vsub.f32 %v1303_v38, %v1309_v42  ;;  %v1310_v45 = vmul.f32 0.0078125, %v1308_v43 }
 0x9fa   :  { %v1312_v46 = vsub.f32 %v1304_v40, %v1310_v45  ;;  %v1313_v47 = vmul.f32 %v1311_v44, %v1311_v44 }
 0x9fc   :  { %1315 = vadd.xlane.f32.xlu0 %v1313_v47  ;;  %v1314_v48 = vmul.f32 %v1312_v46, %v1312_v46 }
 0x9fe   :  { %1317 = vadd.xlane.f32.xlu1 %v1314_v48 }
 0xa89   :  { %v1316_v49 = vpop.xlane.xlu0 %1315 }
 0xa8a   :  { %v1319_v39 = vmul.f32 0.0078125, %v1316_v49 }
 0xa8b   :  { %v1318_v51 = vpop.xlane.xlu1 %1317 }
 0xa8c   :  { %v1321_v52 = vadd.f32 1e-05, %v1319_v39  ;;  %v1320_v53 = vmul.f32 0.0078125, %v1318_v51 }
 0xa8e   :  { %1690 = vrsqrt.f32 %v1321_v52  ;;  %v1322_v54 = vadd.f32 1e-05, %v1320_v53 }
 0xa90   :  { %1692 = vrsqrt.f32 %v1322_v54 }
 0xa98   :  { %v1691_v55 = vpop.eup %1690 }
 0xa99   :  { %v1325_v57 = vmul.f32 %v1691_v55, %v1311_v44 }
 0xa9a   :  { %v1693_v58 = vpop.eup %1692 }
 0xa9b   :  { %v1326_v60 = vmul.f32 %v1693_v58, %v1312_v46  ;;  %v1331_v61 = vmul.f32 %v1441_v56, %v1325_v57 }
 0xa9d   :  { %v1332_v62 = vmul.f32 %v1441_v56, %v1326_v60  ;;  %v1337_v63 = vadd.f32 %v1442_v59, %v1331_v61 }
 0xa9f   :  { %v1338_v0 = vadd.f32 %v1442_v59, %v1332_v62  ;;  %1339 = vst [vmem:[#allocation14] sm:$0xff] %v1337_v63 }
 0xaa1   :  { %1340 = vst [vmem:[#allocation14 + $0x8] sm:$0xff] %v1338_v0 }
 0xaa2   :  { %1837 = shalt.err (!%p1834_p10)
}
 0xaa3   :  { %s1838_s6 = scalar_lea.hbm %s2112_s7, 256 }
 0xaa4   :  { %p1839_p11 = scmp.ne.s32.totalorder %s2112_s7, %s1838_s6  ;;  %p1842_p12 = scmp.lt.u32.totalorder %s1838_s6, %s2112_s7 }
 0xaa6   :  { %p1844_p13 = pnand %p1842_p12, %p1839_p11 }
 0xaa8   :  { %1847 = shalt.err (!%p1844_p13)
}
 0xaa9   :  { %1352 = dma.vmem_to_hbm [thread:$0]  %s1347_s16, 256, %s2112_s7, [#allocation5], %s1859_s11, %s1859_s11, %s1860_s12  }
 0xaaa   :  { %1856 = dma.done.wait [#allocation5], 256  }
 0xaab   :  { %1857 = vsyncadd [#allocation5], 4294967040 }
 0xaac   :  { %1356 = vsyncpa [#allocation4], 1 }
 0xaad   :  { %1357 = vsyncpa [#allocation7], 1 }
 0xaae   :  { %1358 = vsyncpa [#allocation10], 1 }
 0xaaf   :  { %1359 = vsyncpa [#allocation13], 1 }
 0xab0   :  { %1360 = vsyncpa [#allocation5], 1 }

</bundles_post_ra>
